<compile_context>
chip_gen: v5e
topology: v5e:2x2
jax: 0.10.0
libtpu: 0.0.40
codegen_flags: <defaults>
</compile_context>

<pallas_src>
import jax
import jax.numpy as jnp
from jax import lax
from jax.experimental import pallas as pl
from jax.experimental.pallas import tpu as pltpu

_EPS = 1e-5


def _make_kernel(n_head, d_head):
    HD = n_head * d_head

    def kernel(w_ref, r_emb_ref, r_w_bias_ref, r_bias_ref,
               wqkv_ref, wo_ref,
               ln1_w_ref, ln1_b_ref,
               ff_w1_ref, ff_b1_ref, ff_w2_ref, ff_b2_ref,
               ln2_w_ref, ln2_b_ref,
               out_ref):
        Bt, S, D = w_ref.shape
        K = S                                        # klen == qlen (mems=None)
        x2 = w_ref[...].reshape(Bt * S, D)           # merge leading dims (safe)

        # Fused QKV projection (Wq columns pre-scaled by 1/sqrt(d_head)).
        qkv = jnp.dot(x2, wqkv_ref[...],
                      preferred_element_type=jnp.float32)          # [Bt*S, 3HD]

        head_outs = []
        for h in range(n_head):
            lo = h * d_head
            q_h2 = qkv[:, lo:lo + d_head]                          # [Bt*S, Dh]
            k_h3 = qkv[:, HD + lo:HD + lo + d_head].reshape(Bt, S, d_head)
            v_h3 = qkv[:, 2 * HD + lo:2 * HD + lo + d_head].reshape(Bt, S, d_head)

            # AC = (q + r_w_bias) . k^T, batched over Bt (all pre-scaled).
            rw_q3 = (q_h2 + r_w_bias_ref[h]).reshape(Bt, S, d_head)
            ac = jnp.einsum('bid,bjd->bij', rw_q3, k_h3,
                            preferred_element_type=jnp.float32)    # [Bt, S, K]

            # BD: r_emb / r_bias are already rel-shifted (+scaled) in the wrapper,
            # so this is a plain 2D matmul — no shift matmul, no roll/mask.
            bd = jnp.dot(q_h2, r_emb_ref[h],
                         preferred_element_type=jnp.float32).reshape(Bt, S, K)

            score = ac + bd + r_bias_ref[h]                        # + [1, K]
            score = score - jnp.max(score, axis=-1, keepdims=True)
            p = jnp.exp(score)
            p = p * pl.reciprocal(jnp.sum(p, axis=-1, keepdims=True), approx=True)

            head_outs.append(jnp.einsum('bij,bjd->bid', p, v_h3,
                                        preferred_element_type=jnp.float32))

        # One full-width slab instead of per-head masked stores.
        attn_vec = jnp.concatenate(head_outs, axis=-1).reshape(Bt * S, HD)
        attn_out = jnp.dot(attn_vec, wo_ref[...],
                           preferred_element_type=jnp.float32)     # [Bt*S, D]

        def layer_norm(y, g, b):
            mu = jnp.mean(y, axis=-1, keepdims=True)
            var = jnp.mean((y - mu) * (y - mu), axis=-1, keepdims=True)
            return (y - mu) * lax.rsqrt(var + _EPS) * g + b

        # post-lnorm (pre_lnorm=False default)
        attn_res = layer_norm(x2 + attn_out, ln1_w_ref[...], ln1_b_ref[...])

        # PositionwiseFF: Linear -> ReLU -> Linear, residual, LayerNorm
        h1 = jnp.dot(attn_res, ff_w1_ref[...],
                     preferred_element_type=jnp.float32) + ff_b1_ref[...]
        h1 = jnp.maximum(h1, 0.0)
        h2 = jnp.dot(h1, ff_w2_ref[...],
                     preferred_element_type=jnp.float32) + ff_b2_ref[...]
        y = layer_norm(h2 + attn_res, ln2_w_ref[...], ln2_b_ref[...])

        out_ref[...] = y.reshape(Bt, S, D)

    return kernel


def rel_learnable_transformer_layer(w, r_emb, r_w_bias, r_bias, params):
    """dec_inp=w: [B,S,D]; r_emb: [Kr,H,Dh]; r_w_bias: [H,Dh]; r_bias: [Kr,H]."""
    n_head, d_head = params["n_head"], params["d_head"]
    B, S, D = w.shape
    HD = n_head * d_head
    Di = params["ff_w1"].shape[0]
    scale = 1.0 / d_head ** 0.5
    K = S                                     # klen == qlen (mems=None path)

    # Batch block size: fold several batch elements per grid step.
    block_b = min(B, 8)
    while B % block_b:
        block_b -= 1

    # --- wrapper-side glue (runs once per call, outside the kernel) ---------
    # Match the module's r_emb/r_bias pad/truncate when klen != r_emb.size(0).
    if r_emb.shape[0] > K:
        r_emb = r_emb[-K:]
        r_bias = r_bias[-K:]
    elif r_emb.shape[0] < K:
        pad = K - r_emb.shape[0]
        r_emb = jnp.concatenate(
            [jnp.broadcast_to(r_emb[0:1], (pad,) + r_emb.shape[1:]), r_emb], axis=0)
        r_bias = jnp.concatenate(
            [jnp.broadcast_to(r_bias[0:1], (pad,) + r_bias.shape[1:]), r_bias], axis=0)

    # Fused QKV weight with the attention scale folded into Wq.
    wqkv = jnp.concatenate([params["wq"].T * scale,
                            params["wk"].T,
                            params["wv"].T], axis=1)               # [D, 3HD]
    wo_t = params["wo"].T                                          # [HD, D]

    # Pre-apply _rel_shift to the learnable tables:
    #   BD[i, j] = q_i . r_emb[j+1] + r_bias[j+1]  (and 0 for j = K-1)
    r_emb_sh = jnp.concatenate(
        [r_emb[1:], jnp.zeros((1, n_head, d_head), r_emb.dtype)], axis=0)
    r_bias_sh = jnp.concatenate(
        [r_bias[1:], jnp.zeros((1, n_head), r_bias.dtype)], axis=0)
    r_emb_h = jnp.transpose(r_emb_sh, (1, 2, 0))                   # [H, Dh, K]
    r_w_bias_h = (r_w_bias * scale).reshape(n_head, 1, d_head)     # [H, 1, Dh]
    r_bias_h = (r_bias_sh * scale).T.reshape(n_head, 1, K)         # [H, 1, K]

    ff_w1_t = params["ff_w1"].T                                    # [D, Di]
    ff_w2_t = params["ff_w2"].T                                    # [Di, D]
    ff_b1 = params["ff_b1"].reshape(1, Di)
    ff_b2 = params["ff_b2"].reshape(1, D)
    ln1_w = params["ln1_w"].reshape(1, D)
    ln1_b = params["ln1_b"].reshape(1, D)
    ln2_w = params["ln2_w"].reshape(1, D)
    ln2_b = params["ln2_b"].reshape(1, D)

    kernel = _make_kernel(n_head, d_head)

    def full(shape):
        return pl.BlockSpec(shape, lambda b, _r=len(shape): (0,) * _r)

    grid_spec = pltpu.PrefetchScalarGridSpec(
        num_scalar_prefetch=0,
        grid=(B // block_b,),
        in_specs=[
            pl.BlockSpec((block_b, S, D), lambda b: (b, 0, 0)),    # dec_inp
            full((n_head, d_head, K)),                             # r_emb (shifted)
            full((n_head, 1, d_head)),                             # r_w_bias (scaled)
            full((n_head, 1, K)),                                  # r_bias (shift+scale)
            full((D, 3 * HD)),                                     # fused Wqkv^T
            full((HD, D)),                                         # Wo^T
            full((1, D)), full((1, D)),                            # ln1 gamma/beta
            full((D, Di)), full((1, Di)),                          # FF W1^T, b1
            full((Di, D)), full((1, D)),                           # FF W2^T, b2
            full((1, D)), full((1, D)),                            # ln2 gamma/beta
        ],
        out_specs=pl.BlockSpec((block_b, S, D), lambda b: (b, 0, 0)),
    )

    # TODO(synk): at production Transformer-XL sizes, single-buffer the constant
    # weight specs (pipeline_mode=pl.Buffered(1)) / cast them to bf16 and tile
    # the FFN over d_inner to stay inside v7x's 64 MiB VMEM.
    return pl.pallas_call(
        kernel,
        out_shape=jax.ShapeDtypeStruct((B, S, D), jnp.float32),
        grid_spec=grid_spec,
        compiler_params=pltpu.CompilerParams(
            dimension_semantics=("parallel",),
            vmem_limit_bytes=48 * 1024 * 1024),
    )(w, r_emb_h, r_w_bias_h, r_bias_h, wqkv, wo_t,
      ln1_w, ln1_b, ff_w1_t, ff_b1, ff_w2_t, ff_b2, ln2_w, ln2_b)


def reference(w, r_emb, r_w_bias, r_bias, params):
    """Pure-JAX mirror of the PyTorch forward (eval mode), for verification."""
    n_head, d_head = params["n_head"], params["d_head"]
    B, S, D = w.shape
    scale = 1.0 / d_head ** 0.5
    q = (w @ params["wq"].T).reshape(B, S, n_head, d_head)
    k = (w @ params["wk"].T).reshape(B, S, n_head, d_head)
    v = (w @ params["wv"].T).reshape(B, S, n_head, d_head)
    rw_q = q + r_w_bias[None, None]
    AC = jnp.einsum("bind,bjnd->bijn", rw_q, k)
    B_ = jnp.einsum("bind,jnd->bijn", q, r_emb)
    BD_full = B_ + r_bias[None, None]
    zero = jnp.zeros((B, S, 1, n_head), BD_full.dtype)
    BD = jnp.concatenate([BD_full, zero], axis=2)[:, :, 1:, :]
    score = (AC + BD) * scale
    p = jax.nn.softmax(score, axis=2)
    attn_vec = jnp.einsum("bijn,bjnd->bind", p, v).reshape(B, S, n_head * d_head)
    attn_out = attn_vec @ params["wo"].T

    def ln(y, g, b):
        mu = y.mean(-1, keepdims=True)
        var = ((y - mu) ** 2).mean(-1, keepdims=True)
        return (y - mu) / jnp.sqrt(var + _EPS) * g + b

    attn_res = ln(w + attn_out, params["ln1_w"], params["ln1_b"])
    h1 = jax.nn.relu(attn_res @ params["ff_w1"].T + params["ff_b1"])
    h2 = h1 @ params["ff_w2"].T + params["ff_b2"]
    return ln(h2 + attn_res, params["ln2_w"], params["ln2_b"])


if __name__ == "__main__":
    n_head, d_model, d_head, d_inner = 4, 32, 8, 64
    bsz, qlen = 2, 8
    HD = n_head * d_head
    scale = 1.0 / d_head ** 0.5

    key = jax.random.PRNGKey(0)
    ks = jax.random.split(key, 10)

    params = {
        "n_head": n_head, "d_head": d_head,
        "wq": jax.random.normal(ks[0], (HD, d_model), jnp.float32) * scale,
        "wk": jax.random.normal(ks[1], (HD, d_model), jnp.float32) * scale,
        "wv": jax.random.normal(ks[2], (HD, d_model), jnp.float32) * scale,
        "wo": jax.random.normal(ks[3], (d_model, HD), jnp.float32) * scale,
        "ln1_w": jnp.ones((d_model,), jnp.float32),
        "ln1_b": jnp.zeros((d_model,), jnp.float32),
        "ff_w1": jax.random.normal(ks[4], (d_inner, d_model), jnp.float32) / d_model ** 0.5,
        "ff_b1": jnp.zeros((d_inner,), jnp.float32),
        "ff_w2": jax.random.normal(ks[5], (d_model, d_inner), jnp.float32) / d_model ** 0.5,
        "ff_b2": jnp.zeros((d_model,), jnp.float32),
        "ln2_w": jnp.ones((d_model,), jnp.float32),
        "ln2_b": jnp.zeros((d_model,), jnp.float32),
    }

    dec_inp = jax.random.normal(ks[6], (bsz, qlen, d_model), jnp.float32)
    r_emb = jax.random.normal(ks[7], (qlen, n_head, d_head), jnp.float32) * 0.1
    r_w_bias = jax.random.normal(ks[8], (n_head, d_head), jnp.float32) * 0.1
    r_bias = jax.random.normal(ks[9], (qlen, n_head), jnp.float32) * 0.1

    out = rel_learnable_transformer_layer(dec_inp, r_emb, r_w_bias, r_bias, params)
    out = jax.block_until_ready(out)

    ref = reference(dec_inp, r_emb, r_w_bias, r_bias, params)
    err = float(jnp.max(jnp.abs(out - ref)))
    assert err < 1e-2, f"kernel/reference mismatch, max abs err = {err}"
    print("KERNEL_OK")
</pallas_src>

<mosaic_0001>
module attributes {stable_mosaic.version = 11 : i64} {
  func.func @kernel(%arg0: i32, %arg1: memref<2x8x32xf32, #tpu.memory_space<vmem>>, %arg2: memref<4x8x8xf32, #tpu.memory_space<vmem>>, %arg3: memref<4x1x8xf32, #tpu.memory_space<vmem>>, %arg4: memref<4x1x8xf32, #tpu.memory_space<vmem>>, %arg5: memref<32x96xf32, #tpu.memory_space<vmem>>, %arg6: memref<32x32xf32, #tpu.memory_space<vmem>>, %arg7: memref<1x32xf32, #tpu.memory_space<vmem>>, %arg8: memref<1x32xf32, #tpu.memory_space<vmem>>, %arg9: memref<32x64xf32, #tpu.memory_space<vmem>>, %arg10: memref<1x64xf32, #tpu.memory_space<vmem>>, %arg11: memref<64x32xf32, #tpu.memory_space<vmem>>, %arg12: memref<1x32xf32, #tpu.memory_space<vmem>>, %arg13: memref<1x32xf32, #tpu.memory_space<vmem>>, %arg14: memref<1x32xf32, #tpu.memory_space<vmem>>, %arg15: memref<2x8x32xf32, #tpu.memory_space<vmem>>) attributes {dimension_semantics = [#tpu.dimension_semantics<parallel>], iteration_bounds = array<i64: 1>, scalar_prefetch = 0 : i64, scratch_operands = 0 : i64, tpu.core_type = #tpu.core_type<tc>, window_params = [{transform_indices = @transform_0, window_bounds = array<i64: 2, 8, 32>}, {pipeline_mode = #tpu.pipeline_mode<synchronous>, transform_indices = @transform_1, window_bounds = array<i64: 4, 8, 8>}, {pipeline_mode = #tpu.pipeline_mode<synchronous>, transform_indices = @transform_2, window_bounds = array<i64: 4, 1, 8>}, {pipeline_mode = #tpu.pipeline_mode<synchronous>, transform_indices = @transform_3, window_bounds = array<i64: 4, 1, 8>}, {pipeline_mode = #tpu.pipeline_mode<synchronous>, transform_indices = @transform_4, window_bounds = array<i64: 32, 96>}, {pipeline_mode = #tpu.pipeline_mode<synchronous>, transform_indices = @transform_5, window_bounds = array<i64: 32, 32>}, {pipeline_mode = #tpu.pipeline_mode<synchronous>, transform_indices = @transform_6, window_bounds = array<i64: 1, 32>}, {pipeline_mode = #tpu.pipeline_mode<synchronous>, transform_indices = @transform_7, window_bounds = array<i64: 1, 32>}, {pipeline_mode = #tpu.pipeline_mode<synchronous>, transform_indices = @transform_8, window_bounds = array<i64: 32, 64>}, {pipeline_mode = #tpu.pipeline_mode<synchronous>, transform_indices = @transform_9, window_bounds = array<i64: 1, 64>}, {pipeline_mode = #tpu.pipeline_mode<synchronous>, transform_indices = @transform_10, window_bounds = array<i64: 64, 32>}, {pipeline_mode = #tpu.pipeline_mode<synchronous>, transform_indices = @transform_11, window_bounds = array<i64: 1, 32>}, {pipeline_mode = #tpu.pipeline_mode<synchronous>, transform_indices = @transform_12, window_bounds = array<i64: 1, 32>}, {pipeline_mode = #tpu.pipeline_mode<synchronous>, transform_indices = @transform_13, window_bounds = array<i64: 1, 32>}, {transform_indices = @transform_14, window_bounds = array<i64: 2, 8, 32>}]} {
    %c0 = arith.constant 0 : index
    %c0_0 = arith.constant 0 : index
    %c0_1 = arith.constant 0 : index
    %0 = vector.load %arg1[%c0, %c0_0, %c0_1] : memref<2x8x32xf32, #tpu.memory_space<vmem>>, vector<2x8x32xf32>
    %1 = vector.shape_cast %0 : vector<2x8x32xf32> to vector<16x32xf32>
    %c0_2 = arith.constant 0 : index
    %c0_3 = arith.constant 0 : index
    %2 = vector.load %arg5[%c0_2, %c0_3] : memref<32x96xf32, #tpu.memory_space<vmem>>, vector<32x96xf32>
    %cst = arith.constant dense<0.000000e+00> : vector<16x96xf32>
    %3 = tpu.matmul %1, %2, %cst {dimension_numbers = #tpu.dot_dimension_numbers<[1], [0], [0], [1], [0, 0, 1, 1], [], []>} : vector<16x32xf32>, vector<32x96xf32>, vector<16x96xf32> -> vector<16x96xf32>
    %4 = vector.extract_strided_slice %3 {offsets = [0, 0], sizes = [16, 8], strides = [1, 1]} : vector<16x96xf32> to vector<16x8xf32>
    %5 = vector.extract_strided_slice %3 {offsets = [0, 32], sizes = [16, 8], strides = [1, 1]} : vector<16x96xf32> to vector<16x8xf32>
    %6 = vector.shape_cast %5 : vector<16x8xf32> to vector<2x8x8xf32>
    %7 = vector.extract_strided_slice %3 {offsets = [0, 64], sizes = [16, 8], strides = [1, 1]} : vector<16x96xf32> to vector<16x8xf32>
    %8 = vector.shape_cast %7 : vector<16x8xf32> to vector<2x8x8xf32>
    %c0_4 = arith.constant 0 : index
    %c0_5 = arith.constant 0 : index
    %c0_6 = arith.constant 0 : index
    %9 = vector.load %arg3[%c0_4, %c0_5, %c0_6] : memref<4x1x8xf32, #tpu.memory_space<vmem>>, vector<1x1x8xf32>
    %10 = vector.shape_cast %9 : vector<1x1x8xf32> to vector<1x8xf32>
    %11 = vector.broadcast %10 : vector<1x8xf32> to vector<16x8xf32>
    %12 = arith.addf %4, %11 : vector<16x8xf32>
    %13 = vector.shape_cast %12 : vector<16x8xf32> to vector<2x8x8xf32>
    "tpu.trace_start"() <{level = 10 : i32, message = "bid,bjd->bij"}> : () -> ()
    %cst_7 = arith.constant dense<0.000000e+00> : vector<2x8x8xf32>
    %14 = tpu.matmul %13, %6, %cst_7 {dimension_numbers = #tpu.dot_dimension_numbers<[2], [2], [1], [1], [0, 0, 0, 1, 1, 1], [0], [0]>} : vector<2x8x8xf32>, vector<2x8x8xf32>, vector<2x8x8xf32> -> vector<2x8x8xf32>
    "tpu.trace_stop"() : () -> ()
    %c0_8 = arith.constant 0 : index
    %c0_9 = arith.constant 0 : index
    %c0_10 = arith.constant 0 : index
    %15 = vector.load %arg2[%c0_8, %c0_9, %c0_10] : memref<4x8x8xf32, #tpu.memory_space<vmem>>, vector<1x8x8xf32>
    %16 = vector.shape_cast %15 : vector<1x8x8xf32> to vector<8x8xf32>
    %cst_11 = arith.constant dense<0.000000e+00> : vector<16x8xf32>
    %17 = tpu.matmul %4, %16, %cst_11 {dimension_numbers = #tpu.dot_dimension_numbers<[1], [0], [0], [1], [0, 0, 1, 1], [], []>} : vector<16x8xf32>, vector<8x8xf32>, vector<16x8xf32> -> vector<16x8xf32>
    %18 = vector.shape_cast %17 : vector<16x8xf32> to vector<2x8x8xf32>
    %19 = arith.addf %14, %18 : vector<2x8x8xf32>
    %c0_12 = arith.constant 0 : index
    %c0_13 = arith.constant 0 : index
    %c0_14 = arith.constant 0 : index
    %20 = vector.load %arg4[%c0_12, %c0_13, %c0_14] : memref<4x1x8xf32, #tpu.memory_space<vmem>>, vector<1x1x8xf32>
    %21 = vector.shape_cast %20 : vector<1x1x8xf32> to vector<1x8xf32>
    %22 = vector.shape_cast %21 : vector<1x8xf32> to vector<1x1x8xf32>
    %23 = vector.broadcast %22 : vector<1x1x8xf32> to vector<2x8x8xf32>
    %24 = arith.addf %19, %23 : vector<2x8x8xf32>
    %cst_15 = arith.constant dense<0xFF800000> : vector<2x8xf32>
    %25 = vector.multi_reduction <maximumf>, %24, %cst_15 [2] : vector<2x8x8xf32> to vector<2x8xf32>
    %26 = vector.shape_cast %25 : vector<2x8xf32> to vector<2x8x1xf32>
    %27 = vector.broadcast %26 : vector<2x8x1xf32> to vector<2x8x8xf32>
    %28 = arith.subf %24, %27 : vector<2x8x8xf32>
    %29 = math.exp %28 : vector<2x8x8xf32>
    %cst_16 = arith.constant dense<0.000000e+00> : vector<2x8xf32>
    %30 = vector.multi_reduction <add>, %29, %cst_16 [2] : vector<2x8x8xf32> to vector<2x8xf32>
    %31 = vector.shape_cast %30 : vector<2x8xf32> to vector<2x8x1xf32>
    %32 = tpu.reciprocal %31 {approx = true} : vector<2x8x1xf32> -> vector<2x8x1xf32>
    %33 = vector.broadcast %32 : vector<2x8x1xf32> to vector<2x8x8xf32>
    %34 = arith.mulf %29, %33 : vector<2x8x8xf32>
    "tpu.trace_start"() <{level = 10 : i32, message = "bij,bjd->bid"}> : () -> ()
    %cst_17 = arith.constant dense<0.000000e+00> : vector<2x8x8xf32>
    %35 = tpu.matmul %34, %8, %cst_17 {dimension_numbers = #tpu.dot_dimension_numbers<[2], [1], [1], [2], [0, 0, 0, 1, 1, 2], [0], [0]>} : vector<2x8x8xf32>, vector<2x8x8xf32>, vector<2x8x8xf32> -> vector<2x8x8xf32>
    "tpu.trace_stop"() : () -> ()
    %36 = vector.extract_strided_slice %3 {offsets = [0, 8], sizes = [16, 8], strides = [1, 1]} : vector<16x96xf32> to vector<16x8xf32>
    %37 = vector.extract_strided_slice %3 {offsets = [0, 40], sizes = [16, 8], strides = [1, 1]} : vector<16x96xf32> to vector<16x8xf32>
    %38 = vector.shape_cast %37 : vector<16x8xf32> to vector<2x8x8xf32>
    %39 = vector.extract_strided_slice %3 {offsets = [0, 72], sizes = [16, 8], strides = [1, 1]} : vector<16x96xf32> to vector<16x8xf32>
    %40 = vector.shape_cast %39 : vector<16x8xf32> to vector<2x8x8xf32>
    %c1 = arith.constant 1 : index
    %c0_18 = arith.constant 0 : index
    %c0_19 = arith.constant 0 : index
    %41 = vector.load %arg3[%c1, %c0_18, %c0_19] : memref<4x1x8xf32, #tpu.memory_space<vmem>>, vector<1x1x8xf32>
    %42 = vector.shape_cast %41 : vector<1x1x8xf32> to vector<1x8xf32>
    %43 = vector.broadcast %42 : vector<1x8xf32> to vector<16x8xf32>
    %44 = arith.addf %36, %43 : vector<16x8xf32>
    %45 = vector.shape_cast %44 : vector<16x8xf32> to vector<2x8x8xf32>
    "tpu.trace_start"() <{level = 10 : i32, message = "bid,bjd->bij"}> : () -> ()
    %cst_20 = arith.constant dense<0.000000e+00> : vector<2x8x8xf32>
    %46 = tpu.matmul %45, %38, %cst_20 {dimension_numbers = #tpu.dot_dimension_numbers<[2], [2], [1], [1], [0, 0, 0, 1, 1, 1], [0], [0]>} : vector<2x8x8xf32>, vector<2x8x8xf32>, vector<2x8x8xf32> -> vector<2x8x8xf32>
    "tpu.trace_stop"() : () -> ()
    %c1_21 = arith.constant 1 : index
    %c0_22 = arith.constant 0 : index
    %c0_23 = arith.constant 0 : index
    %47 = vector.load %arg2[%c1_21, %c0_22, %c0_23] : memref<4x8x8xf32, #tpu.memory_space<vmem>>, vector<1x8x8xf32>
    %48 = vector.shape_cast %47 : vector<1x8x8xf32> to vector<8x8xf32>
    %cst_24 = arith.constant dense<0.000000e+00> : vector<16x8xf32>
    %49 = tpu.matmul %36, %48, %cst_24 {dimension_numbers = #tpu.dot_dimension_numbers<[1], [0], [0], [1], [0, 0, 1, 1], [], []>} : vector<16x8xf32>, vector<8x8xf32>, vector<16x8xf32> -> vector<16x8xf32>
    %50 = vector.shape_cast %49 : vector<16x8xf32> to vector<2x8x8xf32>
    %51 = arith.addf %46, %50 : vector<2x8x8xf32>
    %c1_25 = arith.constant 1 : index
    %c0_26 = arith.constant 0 : index
    %c0_27 = arith.constant 0 : index
    %52 = vector.load %arg4[%c1_25, %c0_26, %c0_27] : memref<4x1x8xf32, #tpu.memory_space<vmem>>, vector<1x1x8xf32>
    %53 = vector.shape_cast %52 : vector<1x1x8xf32> to vector<1x8xf32>
    %54 = vector.shape_cast %53 : vector<1x8xf32> to vector<1x1x8xf32>
    %55 = vector.broadcast %54 : vector<1x1x8xf32> to vector<2x8x8xf32>
    %56 = arith.addf %51, %55 : vector<2x8x8xf32>
    %cst_28 = arith.constant dense<0xFF800000> : vector<2x8xf32>
    %57 = vector.multi_reduction <maximumf>, %56, %cst_28 [2] : vector<2x8x8xf32> to vector<2x8xf32>
    %58 = vector.shape_cast %57 : vector<2x8xf32> to vector<2x8x1xf32>
    %59 = vector.broadcast %58 : vector<2x8x1xf32> to vector<2x8x8xf32>
    %60 = arith.subf %56, %59 : vector<2x8x8xf32>
    %61 = math.exp %60 : vector<2x8x8xf32>
    %cst_29 = arith.constant dense<0.000000e+00> : vector<2x8xf32>
    %62 = vector.multi_reduction <add>, %61, %cst_29 [2] : vector<2x8x8xf32> to vector<2x8xf32>
    %63 = vector.shape_cast %62 : vector<2x8xf32> to vector<2x8x1xf32>
    %64 = tpu.reciprocal %63 {approx = true} : vector<2x8x1xf32> -> vector<2x8x1xf32>
    %65 = vector.broadcast %64 : vector<2x8x1xf32> to vector<2x8x8xf32>
    %66 = arith.mulf %61, %65 : vector<2x8x8xf32>
    "tpu.trace_start"() <{level = 10 : i32, message = "bij,bjd->bid"}> : () -> ()
    %cst_30 = arith.constant dense<0.000000e+00> : vector<2x8x8xf32>
    %67 = tpu.matmul %66, %40, %cst_30 {dimension_numbers = #tpu.dot_dimension_numbers<[2], [1], [1], [2], [0, 0, 0, 1, 1, 2], [0], [0]>} : vector<2x8x8xf32>, vector<2x8x8xf32>, vector<2x8x8xf32> -> vector<2x8x8xf32>
    "tpu.trace_stop"() : () -> ()
    %68 = vector.extract_strided_slice %3 {offsets = [0, 16], sizes = [16, 8], strides = [1, 1]} : vector<16x96xf32> to vector<16x8xf32>
    %69 = vector.extract_strided_slice %3 {offsets = [0, 48], sizes = [16, 8], strides = [1, 1]} : vector<16x96xf32> to vector<16x8xf32>
    %70 = vector.shape_cast %69 : vector<16x8xf32> to vector<2x8x8xf32>
    %71 = vector.extract_strided_slice %3 {offsets = [0, 80], sizes = [16, 8], strides = [1, 1]} : vector<16x96xf32> to vector<16x8xf32>
    %72 = vector.shape_cast %71 : vector<16x8xf32> to vector<2x8x8xf32>
    %c2 = arith.constant 2 : index
    %c0_31 = arith.constant 0 : index
    %c0_32 = arith.constant 0 : index
    %73 = vector.load %arg3[%c2, %c0_31, %c0_32] : memref<4x1x8xf32, #tpu.memory_space<vmem>>, vector<1x1x8xf32>
    %74 = vector.shape_cast %73 : vector<1x1x8xf32> to vector<1x8xf32>
    %75 = vector.broadcast %74 : vector<1x8xf32> to vector<16x8xf32>
    %76 = arith.addf %68, %75 : vector<16x8xf32>
    %77 = vector.shape_cast %76 : vector<16x8xf32> to vector<2x8x8xf32>
    "tpu.trace_start"() <{level = 10 : i32, message = "bid,bjd->bij"}> : () -> ()
    %cst_33 = arith.constant dense<0.000000e+00> : vector<2x8x8xf32>
    %78 = tpu.matmul %77, %70, %cst_33 {dimension_numbers = #tpu.dot_dimension_numbers<[2], [2], [1], [1], [0, 0, 0, 1, 1, 1], [0], [0]>} : vector<2x8x8xf32>, vector<2x8x8xf32>, vector<2x8x8xf32> -> vector<2x8x8xf32>
    "tpu.trace_stop"() : () -> ()
    %c2_34 = arith.constant 2 : index
    %c0_35 = arith.constant 0 : index
    %c0_36 = arith.constant 0 : index
    %79 = vector.load %arg2[%c2_34, %c0_35, %c0_36] : memref<4x8x8xf32, #tpu.memory_space<vmem>>, vector<1x8x8xf32>
    %80 = vector.shape_cast %79 : vector<1x8x8xf32> to vector<8x8xf32>
    %cst_37 = arith.constant dense<0.000000e+00> : vector<16x8xf32>
    %81 = tpu.matmul %68, %80, %cst_37 {dimension_numbers = #tpu.dot_dimension_numbers<[1], [0], [0], [1], [0, 0, 1, 1], [], []>} : vector<16x8xf32>, vector<8x8xf32>, vector<16x8xf32> -> vector<16x8xf32>
    %82 = vector.shape_cast %81 : vector<16x8xf32> to vector<2x8x8xf32>
    %83 = arith.addf %78, %82 : vector<2x8x8xf32>
    %c2_38 = arith.constant 2 : index
    %c0_39 = arith.constant 0 : index
    %c0_40 = arith.constant 0 : index
    %84 = vector.load %arg4[%c2_38, %c0_39, %c0_40] : memref<4x1x8xf32, #tpu.memory_space<vmem>>, vector<1x1x8xf32>
    %85 = vector.shape_cast %84 : vector<1x1x8xf32> to vector<1x8xf32>
    %86 = vector.shape_cast %85 : vector<1x8xf32> to vector<1x1x8xf32>
    %87 = vector.broadcast %86 : vector<1x1x8xf32> to vector<2x8x8xf32>
    %88 = arith.addf %83, %87 : vector<2x8x8xf32>
    %cst_41 = arith.constant dense<0xFF800000> : vector<2x8xf32>
    %89 = vector.multi_reduction <maximumf>, %88, %cst_41 [2] : vector<2x8x8xf32> to vector<2x8xf32>
    %90 = vector.shape_cast %89 : vector<2x8xf32> to vector<2x8x1xf32>
    %91 = vector.broadcast %90 : vector<2x8x1xf32> to vector<2x8x8xf32>
    %92 = arith.subf %88, %91 : vector<2x8x8xf32>
    %93 = math.exp %92 : vector<2x8x8xf32>
    %cst_42 = arith.constant dense<0.000000e+00> : vector<2x8xf32>
    %94 = vector.multi_reduction <add>, %93, %cst_42 [2] : vector<2x8x8xf32> to vector<2x8xf32>
    %95 = vector.shape_cast %94 : vector<2x8xf32> to vector<2x8x1xf32>
    %96 = tpu.reciprocal %95 {approx = true} : vector<2x8x1xf32> -> vector<2x8x1xf32>
    %97 = vector.broadcast %96 : vector<2x8x1xf32> to vector<2x8x8xf32>
    %98 = arith.mulf %93, %97 : vector<2x8x8xf32>
    "tpu.trace_start"() <{level = 10 : i32, message = "bij,bjd->bid"}> : () -> ()
    %cst_43 = arith.constant dense<0.000000e+00> : vector<2x8x8xf32>
    %99 = tpu.matmul %98, %72, %cst_43 {dimension_numbers = #tpu.dot_dimension_numbers<[2], [1], [1], [2], [0, 0, 0, 1, 1, 2], [0], [0]>} : vector<2x8x8xf32>, vector<2x8x8xf32>, vector<2x8x8xf32> -> vector<2x8x8xf32>
    "tpu.trace_stop"() : () -> ()
    %100 = vector.extract_strided_slice %3 {offsets = [0, 24], sizes = [16, 8], strides = [1, 1]} : vector<16x96xf32> to vector<16x8xf32>
    %101 = vector.extract_strided_slice %3 {offsets = [0, 56], sizes = [16, 8], strides = [1, 1]} : vector<16x96xf32> to vector<16x8xf32>
    %102 = vector.shape_cast %101 : vector<16x8xf32> to vector<2x8x8xf32>
    %103 = vector.extract_strided_slice %3 {offsets = [0, 88], sizes = [16, 8], strides = [1, 1]} : vector<16x96xf32> to vector<16x8xf32>
    %104 = vector.shape_cast %103 : vector<16x8xf32> to vector<2x8x8xf32>
    %c3 = arith.constant 3 : index
    %c0_44 = arith.constant 0 : index
    %c0_45 = arith.constant 0 : index
    %105 = vector.load %arg3[%c3, %c0_44, %c0_45] : memref<4x1x8xf32, #tpu.memory_space<vmem>>, vector<1x1x8xf32>
    %106 = vector.shape_cast %105 : vector<1x1x8xf32> to vector<1x8xf32>
    %107 = vector.broadcast %106 : vector<1x8xf32> to vector<16x8xf32>
    %108 = arith.addf %100, %107 : vector<16x8xf32>
    %109 = vector.shape_cast %108 : vector<16x8xf32> to vector<2x8x8xf32>
    "tpu.trace_start"() <{level = 10 : i32, message = "bid,bjd->bij"}> : () -> ()
    %cst_46 = arith.constant dense<0.000000e+00> : vector<2x8x8xf32>
    %110 = tpu.matmul %109, %102, %cst_46 {dimension_numbers = #tpu.dot_dimension_numbers<[2], [2], [1], [1], [0, 0, 0, 1, 1, 1], [0], [0]>} : vector<2x8x8xf32>, vector<2x8x8xf32>, vector<2x8x8xf32> -> vector<2x8x8xf32>
    "tpu.trace_stop"() : () -> ()
    %c3_47 = arith.constant 3 : index
    %c0_48 = arith.constant 0 : index
    %c0_49 = arith.constant 0 : index
    %111 = vector.load %arg2[%c3_47, %c0_48, %c0_49] : memref<4x8x8xf32, #tpu.memory_space<vmem>>, vector<1x8x8xf32>
    %112 = vector.shape_cast %111 : vector<1x8x8xf32> to vector<8x8xf32>
    %cst_50 = arith.constant dense<0.000000e+00> : vector<16x8xf32>
    %113 = tpu.matmul %100, %112, %cst_50 {dimension_numbers = #tpu.dot_dimension_numbers<[1], [0], [0], [1], [0, 0, 1, 1], [], []>} : vector<16x8xf32>, vector<8x8xf32>, vector<16x8xf32> -> vector<16x8xf32>
    %114 = vector.shape_cast %113 : vector<16x8xf32> to vector<2x8x8xf32>
    %115 = arith.addf %110, %114 : vector<2x8x8xf32>
    %c3_51 = arith.constant 3 : index
    %c0_52 = arith.constant 0 : index
    %c0_53 = arith.constant 0 : index
    %116 = vector.load %arg4[%c3_51, %c0_52, %c0_53] : memref<4x1x8xf32, #tpu.memory_space<vmem>>, vector<1x1x8xf32>
    %117 = vector.shape_cast %116 : vector<1x1x8xf32> to vector<1x8xf32>
    %118 = vector.shape_cast %117 : vector<1x8xf32> to vector<1x1x8xf32>
    %119 = vector.broadcast %118 : vector<1x1x8xf32> to vector<2x8x8xf32>
    %120 = arith.addf %115, %119 : vector<2x8x8xf32>
    %cst_54 = arith.constant dense<0xFF800000> : vector<2x8xf32>
    %121 = vector.multi_reduction <maximumf>, %120, %cst_54 [2] : vector<2x8x8xf32> to vector<2x8xf32>
    %122 = vector.shape_cast %121 : vector<2x8xf32> to vector<2x8x1xf32>
    %123 = vector.broadcast %122 : vector<2x8x1xf32> to vector<2x8x8xf32>
    %124 = arith.subf %120, %123 : vector<2x8x8xf32>
    %125 = math.exp %124 : vector<2x8x8xf32>
    %cst_55 = arith.constant dense<0.000000e+00> : vector<2x8xf32>
    %126 = vector.multi_reduction <add>, %125, %cst_55 [2] : vector<2x8x8xf32> to vector<2x8xf32>
    %127 = vector.shape_cast %126 : vector<2x8xf32> to vector<2x8x1xf32>
    %128 = tpu.reciprocal %127 {approx = true} : vector<2x8x1xf32> -> vector<2x8x1xf32>
    %129 = vector.broadcast %128 : vector<2x8x1xf32> to vector<2x8x8xf32>
    %130 = arith.mulf %125, %129 : vector<2x8x8xf32>
    "tpu.trace_start"() <{level = 10 : i32, message = "bij,bjd->bid"}> : () -> ()
    %cst_56 = arith.constant dense<0.000000e+00> : vector<2x8x8xf32>
    %131 = tpu.matmul %130, %104, %cst_56 {dimension_numbers = #tpu.dot_dimension_numbers<[2], [1], [1], [2], [0, 0, 0, 1, 1, 2], [0], [0]>} : vector<2x8x8xf32>, vector<2x8x8xf32>, vector<2x8x8xf32> -> vector<2x8x8xf32>
    "tpu.trace_stop"() : () -> ()
    %132 = tpu.concatenate %35, %67, %99, %131 in 2 : vector<2x8x8xf32>, vector<2x8x8xf32>, vector<2x8x8xf32>, vector<2x8x8xf32> -> vector<2x8x32xf32>
    %133 = vector.shape_cast %132 : vector<2x8x32xf32> to vector<16x32xf32>
    %c0_57 = arith.constant 0 : index
    %c0_58 = arith.constant 0 : index
    %134 = vector.load %arg6[%c0_57, %c0_58] : memref<32x32xf32, #tpu.memory_space<vmem>>, vector<32x32xf32>
    %cst_59 = arith.constant dense<0.000000e+00> : vector<16x32xf32>
    %135 = tpu.matmul %133, %134, %cst_59 {dimension_numbers = #tpu.dot_dimension_numbers<[1], [0], [0], [1], [0, 0, 1, 1], [], []>} : vector<16x32xf32>, vector<32x32xf32>, vector<16x32xf32> -> vector<16x32xf32>
    %136 = arith.addf %1, %135 : vector<16x32xf32>
    %c0_60 = arith.constant 0 : index
    %c0_61 = arith.constant 0 : index
    %137 = vector.load %arg7[%c0_60, %c0_61] : memref<1x32xf32, #tpu.memory_space<vmem>>, vector<1x32xf32>
    %c0_62 = arith.constant 0 : index
    %c0_63 = arith.constant 0 : index
    %138 = vector.load %arg8[%c0_62, %c0_63] : memref<1x32xf32, #tpu.memory_space<vmem>>, vector<1x32xf32>
    %cst_64 = arith.constant dense<0.000000e+00> : vector<16xf32>
    %139 = vector.multi_reduction <add>, %136, %cst_64 [1] : vector<16x32xf32> to vector<16xf32>
    %140 = vector.shape_cast %139 : vector<16xf32> to vector<16x1xf32>
    %cst_65 = arith.constant 3.200000e+01 : f32
    %141 = vector.broadcast %cst_65 : f32 to vector<16x1xf32>
    %142 = arith.divf %140, %141 : vector<16x1xf32>
    %143 = vector.broadcast %142 : vector<16x1xf32> to vector<16x32xf32>
    %144 = arith.subf %136, %143 : vector<16x32xf32>
    %145 = vector.broadcast %142 : vector<16x1xf32> to vector<16x32xf32>
    %146 = arith.subf %136, %145 : vector<16x32xf32>
    %147 = arith.mulf %144, %146 : vector<16x32xf32>
    %cst_66 = arith.constant dense<0.000000e+00> : vector<16xf32>
    %148 = vector.multi_reduction <add>, %147, %cst_66 [1] : vector<16x32xf32> to vector<16xf32>
    %149 = vector.shape_cast %148 : vector<16xf32> to vector<16x1xf32>
    %cst_67 = arith.constant 3.200000e+01 : f32
    %150 = vector.broadcast %cst_67 : f32 to vector<16x1xf32>
    %151 = arith.divf %149, %150 : vector<16x1xf32>
    %152 = vector.broadcast %142 : vector<16x1xf32> to vector<16x32xf32>
    %153 = arith.subf %136, %152 : vector<16x32xf32>
    %cst_68 = arith.constant 9.99999974E-6 : f32
    %154 = vector.broadcast %cst_68 : f32 to vector<16x1xf32>
    %155 = arith.addf %151, %154 : vector<16x1xf32>
    %156 = math.rsqrt %155 : vector<16x1xf32>
    %157 = vector.broadcast %156 : vector<16x1xf32> to vector<16x32xf32>
    %158 = arith.mulf %153, %157 : vector<16x32xf32>
    %159 = vector.broadcast %137 : vector<1x32xf32> to vector<16x32xf32>
    %160 = arith.mulf %158, %159 : vector<16x32xf32>
    %161 = vector.broadcast %138 : vector<1x32xf32> to vector<16x32xf32>
    %162 = arith.addf %160, %161 : vector<16x32xf32>
    %c0_69 = arith.constant 0 : index
    %c0_70 = arith.constant 0 : index
    %163 = vector.load %arg9[%c0_69, %c0_70] : memref<32x64xf32, #tpu.memory_space<vmem>>, vector<32x64xf32>
    %cst_71 = arith.constant dense<0.000000e+00> : vector<16x64xf32>
    %164 = tpu.matmul %162, %163, %cst_71 {dimension_numbers = #tpu.dot_dimension_numbers<[1], [0], [0], [1], [0, 0, 1, 1], [], []>} : vector<16x32xf32>, vector<32x64xf32>, vector<16x64xf32> -> vector<16x64xf32>
    %c0_72 = arith.constant 0 : index
    %c0_73 = arith.constant 0 : index
    %165 = vector.load %arg10[%c0_72, %c0_73] : memref<1x64xf32, #tpu.memory_space<vmem>>, vector<1x64xf32>
    %166 = vector.broadcast %165 : vector<1x64xf32> to vector<16x64xf32>
    %167 = arith.addf %164, %166 : vector<16x64xf32>
    %cst_74 = arith.constant 0.000000e+00 : f32
    %168 = vector.broadcast %cst_74 : f32 to vector<16x64xf32>
    %169 = arith.maximumf %167, %168 : vector<16x64xf32>
    %c0_75 = arith.constant 0 : index
    %c0_76 = arith.constant 0 : index
    %170 = vector.load %arg11[%c0_75, %c0_76] : memref<64x32xf32, #tpu.memory_space<vmem>>, vector<64x32xf32>
    %cst_77 = arith.constant dense<0.000000e+00> : vector<16x32xf32>
    %171 = tpu.matmul %169, %170, %cst_77 {dimension_numbers = #tpu.dot_dimension_numbers<[1], [0], [0], [1], [0, 0, 1, 1], [], []>} : vector<16x64xf32>, vector<64x32xf32>, vector<16x32xf32> -> vector<16x32xf32>
    %c0_78 = arith.constant 0 : index
    %c0_79 = arith.constant 0 : index
    %172 = vector.load %arg12[%c0_78, %c0_79] : memref<1x32xf32, #tpu.memory_space<vmem>>, vector<1x32xf32>
    %173 = vector.broadcast %172 : vector<1x32xf32> to vector<16x32xf32>
    %174 = arith.addf %171, %173 : vector<16x32xf32>
    %175 = arith.addf %174, %162 : vector<16x32xf32>
    %c0_80 = arith.constant 0 : index
    %c0_81 = arith.constant 0 : index
    %176 = vector.load %arg13[%c0_80, %c0_81] : memref<1x32xf32, #tpu.memory_space<vmem>>, vector<1x32xf32>
    %c0_82 = arith.constant 0 : index
    %c0_83 = arith.constant 0 : index
    %177 = vector.load %arg14[%c0_82, %c0_83] : memref<1x32xf32, #tpu.memory_space<vmem>>, vector<1x32xf32>
    %cst_84 = arith.constant dense<0.000000e+00> : vector<16xf32>
    %178 = vector.multi_reduction <add>, %175, %cst_84 [1] : vector<16x32xf32> to vector<16xf32>
    %179 = vector.shape_cast %178 : vector<16xf32> to vector<16x1xf32>
    %cst_85 = arith.constant 3.200000e+01 : f32
    %180 = vector.broadcast %cst_85 : f32 to vector<16x1xf32>
    %181 = arith.divf %179, %180 : vector<16x1xf32>
    %182 = vector.broadcast %181 : vector<16x1xf32> to vector<16x32xf32>
    %183 = arith.subf %175, %182 : vector<16x32xf32>
    %184 = vector.broadcast %181 : vector<16x1xf32> to vector<16x32xf32>
    %185 = arith.subf %175, %184 : vector<16x32xf32>
    %186 = arith.mulf %183, %185 : vector<16x32xf32>
    %cst_86 = arith.constant dense<0.000000e+00> : vector<16xf32>
    %187 = vector.multi_reduction <add>, %186, %cst_86 [1] : vector<16x32xf32> to vector<16xf32>
    %188 = vector.shape_cast %187 : vector<16xf32> to vector<16x1xf32>
    %cst_87 = arith.constant 3.200000e+01 : f32
    %189 = vector.broadcast %cst_87 : f32 to vector<16x1xf32>
    %190 = arith.divf %188, %189 : vector<16x1xf32>
    %191 = vector.broadcast %181 : vector<16x1xf32> to vector<16x32xf32>
    %192 = arith.subf %175, %191 : vector<16x32xf32>
    %cst_88 = arith.constant 9.99999974E-6 : f32
    %193 = vector.broadcast %cst_88 : f32 to vector<16x1xf32>
    %194 = arith.addf %190, %193 : vector<16x1xf32>
    %195 = math.rsqrt %194 : vector<16x1xf32>
    %196 = vector.broadcast %195 : vector<16x1xf32> to vector<16x32xf32>
    %197 = arith.mulf %192, %196 : vector<16x32xf32>
    %198 = vector.broadcast %176 : vector<1x32xf32> to vector<16x32xf32>
    %199 = arith.mulf %197, %198 : vector<16x32xf32>
    %200 = vector.broadcast %177 : vector<1x32xf32> to vector<16x32xf32>
    %201 = arith.addf %199, %200 : vector<16x32xf32>
    %202 = vector.shape_cast %201 : vector<16x32xf32> to vector<2x8x32xf32>
    %c0_89 = arith.constant 0 : index
    %c0_90 = arith.constant 0 : index
    %c0_91 = arith.constant 0 : index
    %203 = vector.load %arg15[%c0_89, %c0_90, %c0_91] : memref<2x8x32xf32, #tpu.memory_space<vmem>>, vector<2x8x32xf32>
    tpu.vector_store %arg15[%c0_89, %c0_90, %c0_91], %202 {strides = array<i32>} : memref<2x8x32xf32, #tpu.memory_space<vmem>>, vector<2x8x32xf32>,
    return
  }
  func.func @transform_0(%arg0: i32) -> (i32, i32, i32) {
    %c0_i32 = arith.constant 0 : i32
    %c0_i32_0 = arith.constant 0 : i32
    %c0_i32_1 = arith.constant 0 : i32
    return %arg0, %c0_i32, %c0_i32_0 : i32, i32, i32
  }
  func.func @transform_1(%arg0: i32) -> (i32, i32, i32) {
    %c0_i32 = arith.constant 0 : i32
    %c0_i32_0 = arith.constant 0 : i32
    %c0_i32_1 = arith.constant 0 : i32
    %c0_i32_2 = arith.constant 0 : i32
    return %c0_i32, %c0_i32_0, %c0_i32_1 : i32, i32, i32
  }
  func.func @transform_2(%arg0: i32) -> (i32, i32, i32) {
    %c0_i32 = arith.constant 0 : i32
    %c0_i32_0 = arith.constant 0 : i32
    %c0_i32_1 = arith.constant 0 : i32
    %c0_i32_2 = arith.constant 0 : i32
    return %c0_i32, %c0_i32_0, %c0_i32_1 : i32, i32, i32
  }
  func.func @transform_3(%arg0: i32) -> (i32, i32, i32) {
    %c0_i32 = arith.constant 0 : i32
    %c0_i32_0 = arith.constant 0 : i32
    %c0_i32_1 = arith.constant 0 : i32
    %c0_i32_2 = arith.constant 0 : i32
    return %c0_i32, %c0_i32_0, %c0_i32_1 : i32, i32, i32
  }
  func.func @transform_4(%arg0: i32) -> (i32, i32) {
    %c0_i32 = arith.constant 0 : i32
    %c0_i32_0 = arith.constant 0 : i32
    %c0_i32_1 = arith.constant 0 : i32
    return %c0_i32, %c0_i32_0 : i32, i32
  }
  func.func @transform_5(%arg0: i32) -> (i32, i32) {
    %c0_i32 = arith.constant 0 : i32
    %c0_i32_0 = arith.constant 0 : i32
    %c0_i32_1 = arith.constant 0 : i32
    return %c0_i32, %c0_i32_0 : i32, i32
  }
  func.func @transform_6(%arg0: i32) -> (i32, i32) {
    %c0_i32 = arith.constant 0 : i32
    %c0_i32_0 = arith.constant 0 : i32
    %c0_i32_1 = arith.constant 0 : i32
    return %c0_i32, %c0_i32_0 : i32, i32
  }
  func.func @transform_7(%arg0: i32) -> (i32, i32) {
    %c0_i32 = arith.constant 0 : i32
    %c0_i32_0 = arith.constant 0 : i32
    %c0_i32_1 = arith.constant 0 : i32
    return %c0_i32, %c0_i32_0 : i32, i32
  }
  func.func @transform_8(%arg0: i32) -> (i32, i32) {
    %c0_i32 = arith.constant 0 : i32
    %c0_i32_0 = arith.constant 0 : i32
    %c0_i32_1 = arith.constant 0 : i32
    return %c0_i32, %c0_i32_0 : i32, i32
  }
  func.func @transform_9(%arg0: i32) -> (i32, i32) {
    %c0_i32 = arith.constant 0 : i32
    %c0_i32_0 = arith.constant 0 : i32
    %c0_i32_1 = arith.constant 0 : i32
    return %c0_i32, %c0_i32_0 : i32, i32
  }
  func.func @transform_10(%arg0: i32) -> (i32, i32) {
    %c0_i32 = arith.constant 0 : i32
    %c0_i32_0 = arith.constant 0 : i32
    %c0_i32_1 = arith.constant 0 : i32
    return %c0_i32, %c0_i32_0 : i32, i32
  }
  func.func @transform_11(%arg0: i32) -> (i32, i32) {
    %c0_i32 = arith.constant 0 : i32
    %c0_i32_0 = arith.constant 0 : i32
    %c0_i32_1 = arith.constant 0 : i32
    return %c0_i32, %c0_i32_0 : i32, i32
  }
  func.func @transform_12(%arg0: i32) -> (i32, i32) {
    %c0_i32 = arith.constant 0 : i32
    %c0_i32_0 = arith.constant 0 : i32
    %c0_i32_1 = arith.constant 0 : i32
    return %c0_i32, %c0_i32_0 : i32, i32
  }
  func.func @transform_13(%arg0: i32) -> (i32, i32) {
    %c0_i32 = arith.constant 0 : i32
    %c0_i32_0 = arith.constant 0 : i32
    %c0_i32_1 = arith.constant 0 : i32
    return %c0_i32, %c0_i32_0 : i32, i32
  }
  func.func @transform_14(%arg0: i32) -> (i32, i32, i32) {
    %c0_i32 = arith.constant 0 : i32
    %c0_i32_0 = arith.constant 0 : i32
    %c0_i32_1 = arith.constant 0 : i32
    return %arg0, %c0_i32, %c0_i32_0 : i32, i32, i32
  }
}

</mosaic_0001>

<bundles_post_ra>
// kernel: tpu_custom_call.1
= control target key start
LH: loop header
LB: loop body
LE: loop exit
PB: predicated region body
PF: predicated region fallthrough
CT: control target
= control target key end

     0   :  { %19 = vsyncpa [#allocation3], 0  ;;  %s1775_s0 = inlined_call_operand.hbm [shape: f32[2,8,32], index: 0, kind: input, shape index: {}]   ;;  %s1776_s1 = inlined_call_operand.vmem [shape: f32[4,8,8], index: 1, kind: input, shape index: {}]   ;;  %s1777_s2 = inlined_call_operand.hbm [shape: f32[4,1,8], index: 2, kind: input, shape index: {}]   ;;  %s1778_s3 = inlined_call_operand.hbm [shape: f32[4,1,8], index: 3, kind: input, shape index: {}]   ;;  %s1779_s4 = inlined_call_operand.vmem [shape: f32[32,96], index: 4, kind: input, shape index: {}]   ;;  %s1780_s5 = inlined_call_operand.vmem [shape: f32[32,32], index: 5, kind: input, shape index: {}]   ;;  %s1781_s6 = inlined_call_operand.vmem [shape: f32[1,32], index: 6, kind: input, shape index: {}]   ;;  %s1782_s7 = inlined_call_operand.vmem [shape: f32[1,32], index: 7, kind: input, shape index: {}]   ;;  %s1783_s8 = inlined_call_operand.hbm [shape: f32[32,64], index: 8, kind: input, shape index: {}]   ;;  %s1784_s9 = inlined_call_operand.vmem [shape: f32[1,64], index: 9, kind: input, shape index: {}]   ;;  %s1785_s10 = inlined_call_operand.vmem [shape: f32[64,32], index: 10, kind: input, shape index: {}]   ;;  %s1786_s11 = inlined_call_operand.vmem [shape: f32[1,32], index: 11, kind: input, shape index: {}]   ;;  %s1787_s12 = inlined_call_operand.vmem [shape: f32[1,32], index: 12, kind: input, shape index: {}]   ;;  %s1788_s13 = inlined_call_operand.vmem [shape: f32[1,32], index: 13, kind: input, shape index: {}]   ;;  %s1789_s14 = inlined_call_operand.hbm [shape: f32[2,8,32], index: 14, kind: output, shape index: {}]  }
   0x1   :  { %20 = vsyncpa [#allocation6], 0 }
   0x2   :  { %21 = vsyncpa [#allocation9], 0  ;;  %s42_s15 = sshll.u32 %s1777_s2, 4  ;;  %s43_s15 = int_to_ptr.hbm [resolvable:$true] %s42_s15 }
   0x3   :  { %22 = vsyncpa [#allocation4], 0  ;;  %s1408_s16 = smov [#allocation5]   ;;  %s27_s20 = sshll.u32 %s1775_s0, 4  ;;  %s28_s20 = int_to_ptr.hbm [resolvable:$true] %s27_s20 }
   0x4   :  { %s44_s17 = sshll.u32 %s1408_s16, 4  ;;  %s1409_s21 = smov 16   ;;  %s45_s17 = int_to_ptr.vmem [resolvable:$true] %s44_s17 }
   0x5   :  { %s1410_s22 = smov 1   ;;  %s1411_s23 = smov [#allocation2]  }
   0x6   :  { %50 = dma.hbm_to_vmem [thread:$0]  %s43_s15, 64, %s45_s17, [#allocation6], %s1409_s21, %s1409_s21, %s1410_s22  }
   0x7   :  { %s29_s24 = sshll.u32 %s1411_s23, 4  ;;  %s1412_s25 = smov 128   ;;  %s30_s24 = int_to_ptr.vmem [resolvable:$true] %s29_s24 }
   0x8   :  { %s1413_s2 = smov 8   ;;  %s55_s28 = sshll.u32 %s1778_s3, 4  ;;  %s56_s28 = int_to_ptr.hbm [resolvable:$true] %s55_s28 }
   0x9   :  { %35 = dma.hbm_to_vmem [thread:$0]  %s28_s20, 256, %s30_s24, [#allocation3], %s1412_s25, %s1412_s25, %s1413_s2  }
   0xa   :  { %s1414_s0 = smov [#allocation7]   ;;  %s76_s16 = sshll.u32 %s1783_s8, 4  ;;  %s77_s16 = int_to_ptr.hbm [resolvable:$true] %s76_s16 }
   0xb   :  { %s57_s29 = sshll.u32 %s1414_s0, 4  ;;  %s1415_s17 = smov [#allocation8]   ;;  %s58_s29 = int_to_ptr.vmem [resolvable:$true] %s57_s29 }
   0xc   :  { %63 = dma.hbm_to_vmem [thread:$0]  %s56_s28, 64, %s58_s29, [#allocation6], %s1409_s21, %s1409_s21, %s1410_s22  }
   0xd   :  { %s78_s18 = sshll.u32 %s1415_s17, 4  ;;  %s79_s18 = int_to_ptr.vmem [resolvable:$true] %s78_s18 }
   0xe   :  { %84 = dma.hbm_to_vmem [thread:$0]  %s77_s16, 512, %s79_s18, [#allocation9], %s1412_s25, %s1412_s25, %s1413_s2  }
   0xf   :  { %1400 = dma.done.wait [#allocation3], 256  }
  0x10   :  { %1401 = vsyncadd [#allocation3], 4294967040 }
  0x11   :  { %1402 = dma.done.wait [#allocation6], 128  }
  0x12   :  { %1403 = vsyncadd [#allocation6], 4294967168 }
  0x13   :  { %1404 = dma.done.wait [#allocation9], 512  }
  0x14   :  { %1405 = vsyncadd [#allocation9], 4294966784  ;;  %v116_v0 = vld [vmem:[%s1779_s4 + $0x18] sm:$0xff]  ;;  %v115_v1 = vld [vmem:[%s1779_s4 + $0x10] sm:$0xff]  ;;  %vm117_vm0 = vcmask 261120   ;;  %vm154_vm1 = vcmask 64512  }
  0x15   :  { %136 = vmatpush.msra.mxu0 %v116_v0  ;;  %v114_v2 = vld [vmem:[%s1779_s4 + $0x8] sm:$0xff]  ;;  %v113_v3 = vld [vmem:[%s1779_s4] sm:$0xff]  ;;  %v1224_v4 = vld [vmem:[#allocation5 + $0x1] ss:$0 sm:$0xff]  ;;  %s1416_s4 = smov 96   ;;  %s1417_s0 = smov 64  }
  0x16   :  { %322 = vrot.lane.b32.xlu1 %v1224_v4, %s1413_s2  ;;  %v1540_v5 = vld [vmem:[#allocation2] sm:$0xff]  ;;  %v1544_v6 = vld [vmem:[#allocation2 + $0x8] sm:$0xff]  ;;  %s1418_s29 = smov 88   ;;  %s1419_s30 = smov 120   ;;  %v1225_v13 = vld [vmem:[#allocation5] ss:$0 sm:$0xff] }
  0x17   :  { %137 = vmatpush.msra.mxu0 %v115_v1  ;;  %v153_v7 = vld [vmem:[%s1776_s1] sm:$0xff]  ;;  %v1163_v12 = vld [vmem:[%s1776_s1 + $0x8] sm:$0xff]  ;;  %v1226_v23 = vld [vmem:[#allocation7] ss:$0 sm:$0xff]  ;;  %s1420_s17 = smov 112   ;;  %s1421_s18 = smov 24  }
  0x18   :  { %176 = vmatpush.msra.mxu1 %v153_v7  ;;  %1196 = vmatpush.msra.mxu2 %v153_v7  ;;  %v1227_v43 = vld [vmem:[#allocation5 + $0x2] ss:$0 sm:$0xff]  ;;  %v1228_v49 = vld [vmem:[#allocation5 + $0x3] ss:$0 sm:$0xff]  ;;  %v1229_v52 = vld [vmem:[#allocation7 + $0x1] ss:$0 sm:$0xff] }
  0x19   :  { %138 = vmatpush.msra.mxu0 %v114_v2  ;;  %s1422_s3 = smov 56   ;;  %s1423_s19 = smov 80   ;;  %v1172_v4 = vld [vmem:[%s1776_s1 + $0x10] sm:$0xff]  ;;  %vm887_vm2 = vcmask 130048   ;;  %vm890_vm3 = vcmask 195584   ;;  %vm1042_vm11 = vcmask 523264  }
  0x1a   :  { %352 = vmatpush.msrb.mxu1 %v1163_v12  ;;  %s1424_s22 = smov 48   ;;  %s1425_s23 = smov 72  }
  0x1b   :  { %139 = vmatpush.msra.mxu0 %v113_v3  ;;  %s1426_s24 = smov 104   ;;  %s1138_s8 = sshll.u32 %s1789_s14, 4  ;;  %s1139_s8 = int_to_ptr.hbm [resolvable:$true] %s1138_s8 }
  0x1c   :  { %1153 = vmatmul.msk.f32.vlgmr.msra.gmra.mxu0 %vm117_vm0, %v1540_v5 }
  0x24   :  { %1154 = vmatmul.msk.f32.gmra.mxu0 %vm117_vm0, %v1544_v6 }
  0x88   :  { %v1565_v10 = vpop.permute.xlu1 %322 }
  0x99   :  { %v1551_v8 = vpop.f32.mrf.mxu0 }
  0x9a   :  { %184 = vrot.lane.b32.xlu0 %v1551_v8, %s1416_s4  ;;  %1155 = vmatmul.msk.f32.vlgmr.msra.gmra.mxu1 %vm154_vm1, %v1551_v8  ;;  %v325_v11 = vadd.f32 %v1565_v10, %v1551_v8  ;;  %v151_v19 = vadd.f32 %v1225_v13, %v1551_v8 }
  0xa1   :  { %v1556_v9 = vpop.f32.mrf.mxu0 }
  0xa2   :  { %211 = vrot.lane.b32.xlu2 %v1556_v9, %s1416_s4  ;;  %1156 = vmatmul.msk.f32.vlgmr.msra.gmra.mxu2 %vm154_vm1, %v1556_v9  ;;  %v152_v15 = vadd.f32 %v1225_v13, %v1556_v9  ;;  %v326_v58 = vadd.f32 %v1565_v10, %v1556_v9 }
  0xaa   :  { %266 = vrot.lane.b32.xlu2 %v1551_v8, %s1417_s0 }
  0xb2   :  { %363 = vrot.lane.b32.xlu2 %v1551_v8, %s1418_s29 }
  0xba   :  { %361 = vrot.lane.b32.xlu2 %v325_v11, %s1419_s30 }
  0xc2   :  { %329 = vrot.lane.b32.xlu2 %v1551_v8, %s1419_s30 }
  0xfc   :  { %v212_v14 = vpop.permute.xlu2 %211 }
  0xfd   :  { %1159 = vmatpush.xpose.msk.msra.mxu3 %vm154_vm1, %v212_v14 }
 0x100   :  { %1160 = vmatmul.msk.f32.vlgmr.msra.gmra.mxu3 %vm154_vm1, %v152_v15 }
 0x104   :  { %v267_v16 = vpop.permute.xlu2 %266 }
 0x10c   :  { %v185_v17 = vpop.permute.xlu0 %184  ;;  %v364_v18 = vpop.permute.xlu2 %363 }
 0x10d   :  { %1157 = vmatpush.xpose.msk.msrb.mxu2 %vm154_vm1, %v185_v17 }
 0x110   :  { %1158 = vmatmul.msk.f32.vlgmr.msrb.gmra.mxu2 %vm154_vm1, %v151_v19 }
 0x111   :  { %287 = vmatpush.msra.mxu2 %v267_v16 }
 0x113   :  { %1166 = vmatpush.xpose.msk.msrb.mxu2 %vm154_vm1, %v364_v18 }
 0x114   :  { %v362_v20 = vpop.permute.xlu2 %361 }
 0x117   :  { %v178_v28 = vpop.f32.mrf.mxu1 }
 0x11c   :  { %v330_v21 = vpop.permute.xlu2 %329 }
 0x11d   :  { %1164 = vmatmul.msk.f32.vlgmr.msrb.gmra.mxu1 %vm154_vm1, %v330_v21 }
 0x125   :  { %v181_v22 = vpop.f32.mrf.mxu2 }
 0x183   :  { %v235_v24 = vpop.f32.mrf.mxu3 }
 0x184   :  { %v236_v25 = vadd.f32 %v235_v24, %v181_v22 }
 0x186   :  { %v243_v26 = vadd.f32 %v1226_v23, %v236_v25 }
 0x188   :  { %v247_v27 = vsel %vm154_vm1, %v243_v26, -inf }
 0x189   :  { %248 = vmax.xlane.f32.xlu2 %v247_v27 }
 0x193   :  { %v208_v29 = vpop.f32.mrf.mxu2 }
 0x194   :  { %v209_v30 = vadd.f32 %v208_v29, %v178_v28 }
 0x196   :  { %v242_v31 = vadd.f32 %v1226_v23, %v209_v30 }
 0x198   :  { %v244_v32 = vsel %vm154_vm1, %v242_v31, -inf }
 0x199   :  { %245 = vmax.xlane.f32.xlu0 %v244_v32 }
 0x19a   :  { %v354_v53 = vpop.f32.mrf.mxu1 }
 0x1a1   :  { %392 = vrot.lane.b32.xlu2 %v1556_v9, %s1418_s29 }
 0x1a9   :  { %510 = vrot.lane.b32.xlu2 %v1551_v8, %s1420_s17 }
 0x1fc   :  { %v249_v33 = vpop.xlane.xlu2 %248 }
 0x1fd   :  { %v251_v34 = vsub.f32 %v243_v26, %v249_v33  ;;  %v1630_v26 = vld [vmem:[#allocation7 + $0x2] ss:$0 sm:$0xff] }
 0x1ff   :  { %v254_v35 = vmul.f32 1.442695, %v251_v34 }
 0x201   :  { %1238 = vpow2.f32 %v254_v35 }
 0x204   :  { %v393_v7 = vpop.permute.xlu2 %392 }
 0x207   :  { %v1239_v36 = vpop.eup %1238 }
 0x208   :  { %v259_v37 = vsel %vm154_vm1, %v1239_v36, 0.0 }
 0x209   :  { %260 = vadd.xlane.f32.xlu0 %v259_v37 }
 0x20c   :  { %v246_v38 = vpop.xlane.xlu0 %245  ;;  %v511_v12 = vpop.permute.xlu2 %510 }
 0x20d   :  { %v250_v39 = vsub.f32 %v242_v31, %v246_v38 }
 0x20f   :  { %v252_v40 = vmul.f32 1.442695, %v250_v39 }
 0x211   :  { %1240 = vpow2.f32 %v252_v40 }
 0x217   :  { %v1241_v41 = vpop.eup %1240 }
 0x218   :  { %v256_v42 = vsel %vm154_vm1, %v1241_v41, 0.0 }
 0x219   :  { %257 = vadd.xlane.f32.xlu1 %v256_v42 }
 0x232   :  { %503 = vrot.lane.b32.xlu1 %v1227_v43, %s1409_s21 }
 0x27c   :  { %v261_v59 = vpop.xlane.xlu0 %260 }
 0x28c   :  { %v258_v44 = vpop.xlane.xlu1 %257 }
 0x28d   :  { %1242 = vrcp.f32 %v258_v44 }
 0x293   :  { %v1243_v45 = vpop.eup %1242 }
 0x294   :  { %v264_v46 = vmul.f32 %v1243_v45, %v1241_v41 }
 0x296   :  { %1161 = vmatmul.msk.f32.vlgmr.msra.gmra.mxu2 %vm154_vm1, %v264_v46 }
 0x29e   :  { %1167 = vmatmul.msk.f32.vlgmr.msrb.gmra.mxu2 %vm154_vm1, %v362_v20 }
 0x2a4   :  { %v504_v47 = vpop.permute.xlu1 %503 }
 0x2a5   :  { %v506_v48 = vadd.f32 %v504_v47, %v1551_v8  ;;  %v507_v50 = vadd.f32 %v504_v47, %v1556_v9 }
 0x2a7   :  { %542 = vrot.lane.b32.xlu2 %v506_v48, %s1420_s17 }
 0x2af   :  { %684 = vrot.lane.b32.xlu2 %v1228_v49, %s1421_s18 }
 0x2b7   :  { %571 = vrot.lane.b32.xlu2 %v507_v50, %s1420_s17 }
 0x301   :  { %v543_v18 = vpop.permute.xlu2 %542 }
 0x309   :  { %v685_v37 = vpop.permute.xlu2 %684 }
 0x30a   :  { %v687_v38 = vadd.f32 %v685_v37, %v1551_v8  ;;  %v688_v39 = vadd.f32 %v685_v37, %v1556_v9 }
 0x319   :  { %v1599_v51 = vpop.f32.mrf.mxu2 }
 0x321   :  { %v386_v54 = vpop.f32.mrf.mxu2 }
 0x322   :  { %v387_v55 = vadd.f32 %v386_v54, %v354_v53  ;;  %v572_v54 = vpop.permute.xlu2 %571 }
 0x324   :  { %v423_v56 = vadd.f32 %v1229_v52, %v387_v55 }
 0x326   :  { %v425_v57 = vsel %vm154_vm1, %v423_v56, -inf }
 0x327   :  { %426 = vmax.xlane.f32.xlu0 %v425_v57 }
 0x33b   :  { %292 = vrot.lane.b32.xlu0 %v1556_v9, %s1417_s0 }
 0x343   :  { %390 = vrot.lane.b32.xlu0 %v326_v58, %s1419_s30 }
 0x34b   :  { %447 = vrot.lane.b32.xlu0 %v1551_v8, %s1422_s3 }
 0x353   :  { %331 = vrot.lane.b32.xlu0 %v1556_v9, %s1419_s30 }
 0x35b   :  { %544 = vrot.lane.b32.xlu0 %v1551_v8, %s1423_s19 }
 0x39a   :  { %v427_v60 = vpop.xlane.xlu0 %426 }
 0x39b   :  { %v431_v61 = vsub.f32 %v423_v56, %v427_v60 }
 0x39d   :  { %v433_v62 = vmul.f32 1.442695, %v431_v61 }
 0x39f   :  { %1244 = vpow2.f32 %v433_v62 }
 0x3a0   :  { %1246 = vrcp.f32 %v261_v59 }
 0x3a5   :  { %v1245_v63 = vpop.eup %1244 }
 0x3a6   :  { %v437_v0 = vsel %vm154_vm1, %v1245_v63, 0.0  ;;  %v1247_v1 = vpop.eup %1246 }
 0x3a7   :  { %438 = vadd.xlane.f32.xlu1 %v437_v0  ;;  %v265_v3 = vmul.f32 %v1247_v1, %v1239_v36 }
 0x3ad   :  { %v293_v2 = vpop.permute.xlu0 %292 }
 0x3ae   :  { %313 = vmatpush.msrb.mxu3 %v293_v2 }
 0x3af   :  { %1162 = vmatmul.msk.f32.vlgmr.msrb.gmra.mxu3 %vm154_vm1, %v265_v3 }
 0x3b0   :  { %1168 = vmatpush.xpose.msk.msra.mxu3 %vm154_vm1, %v393_v7 }
 0x3b4   :  { %533 = vmatpush.msrb.mxu3 %v1172_v4 }
 0x3b5   :  { %v391_v10 = vpop.permute.xlu0 %390 }
 0x3b7   :  { %1169 = vmatmul.msk.f32.vlgmr.msra.gmra.mxu3 %vm154_vm1, %v391_v10 }
 0x3bd   :  { %v448_v11 = vpop.permute.xlu0 %447 }
 0x3be   :  { %468 = vmatpush.msrb.mxu0 %v448_v11  ;;  %v1231_v11 = vld [vmem:[#allocation7 + $0x3] ss:$0 sm:$0xff] }
 0x3bf   :  { %1173 = vmatmul.msk.f32.vlgmr.msrb.gmra.mxu3 %vm154_vm1, %v511_v12 }
 0x3c5   :  { %v332_v13 = vpop.permute.xlu0 %331 }
 0x3c6   :  { %1165 = vmatmul.msk.f32.gmra.mxu1 %vm154_vm1, %v332_v13 }
 0x3cd   :  { %v545_v14 = vpop.permute.xlu0 %544 }
 0x3ce   :  { %1175 = vmatpush.xpose.msk.msra.mxu0 %vm154_vm1, %v545_v14 }
 0x41a   :  { %v439_v15 = vpop.xlane.xlu1 %438 }
 0x41b   :  { %1248 = vrcp.f32 %v439_v15 }
 0x421   :  { %v1249_v16 = vpop.eup %1248 }
 0x422   :  { %v445_v17 = vmul.f32 %v1249_v16, %v1245_v63 }
 0x424   :  { %1170 = vmatmul.msk.f32.vlgmr.msrb.gmra.mxu0 %vm154_vm1, %v445_v17 }
 0x42c   :  { %1176 = vmatmul.msk.f32.vlgmr.msra.gmra.mxu0 %vm154_vm1, %v543_v18 }
 0x432   :  { %v1625_v19 = vpop.f32.mrf.mxu3 }
 0x43a   :  { %v415_v20 = vpop.f32.mrf.mxu3 }
 0x442   :  { %v535_v27 = vpop.f32.mrf.mxu3 }
 0x443   :  { %v357_v21 = vpop.f32.mrf.mxu1 }
 0x444   :  { %v416_v22 = vadd.f32 %v415_v20, %v357_v21 }
 0x446   :  { %v424_v23 = vadd.f32 %v1229_v52, %v416_v22  ;;  %v1181_v52 = vld [vmem:[%s1776_s1 + $0x18] sm:$0xff]  ;;  %s1427_s1 = smov 40  }
 0x448   :  { %v428_v24 = vsel %vm154_vm1, %v424_v23, -inf }
 0x449   :  { %429 = vmax.xlane.f32.xlu1 %v428_v24 }
 0x4a1   :  { %v1628_v25 = vpop.f32.mrf.mxu0 }
 0x4a9   :  { %v567_v28 = vpop.f32.mrf.mxu0 }
 0x4aa   :  { %v568_v29 = vadd.f32 %v567_v28, %v535_v27 }
 0x4ac   :  { %v604_v30 = vadd.f32 %v1630_v26, %v568_v29 }
 0x4ae   :  { %v606_v31 = vsel %vm154_vm1, %v604_v30, -inf }
 0x4af   :  { %607 = vmax.xlane.f32.xlu0 %v606_v31 }
 0x4bc   :  { %v430_v32 = vpop.xlane.xlu1 %429 }
 0x4bd   :  { %v432_v33 = vsub.f32 %v424_v23, %v430_v32 }
 0x4bf   :  { %v435_v34 = vmul.f32 1.442695, %v432_v33 }
 0x4c1   :  { %1250 = vpow2.f32 %v435_v34 }
 0x4c3   :  { %628 = vrot.lane.b32.xlu0 %v1551_v8, %s1424_s22 }
 0x4c7   :  { %v1251_v35 = vpop.eup %1250 }
 0x4c8   :  { %v440_v36 = vsel %vm154_vm1, %v1251_v35, 0.0 }
 0x4c9   :  { %441 = vadd.xlane.f32.xlu1 %v440_v36 }
 0x4cb   :  { %754 = vrot.lane.b32.xlu0 %v1556_v9, %s1425_s23 }
 0x4d3   :  { %723 = vrot.lane.b32.xlu0 %v687_v38, %s1426_s24 }
 0x4e2   :  { %473 = vrot.lane.b32.xlu1 %v1556_v9, %s1422_s3 }
 0x4ea   :  { %573 = vrot.lane.b32.xlu1 %v1556_v9, %s1423_s19 }
 0x4f2   :  { %512 = vrot.lane.b32.xlu1 %v1556_v9, %s1420_s17 }
 0x4fa   :  { %725 = vrot.lane.b32.xlu1 %v1551_v8, %s1425_s23 }
 0x502   :  { %691 = vrot.lane.b32.xlu1 %v1551_v8, %s1426_s24 }
 0x50a   :  { %752 = vrot.lane.b32.xlu1 %v688_v39, %s1426_s24 }
 0x522   :  { %v608_v40 = vpop.xlane.xlu0 %607 }
 0x523   :  { %v612_v41 = vsub.f32 %v604_v30, %v608_v40  ;;  %v1219_v40 = vpack.i.bf16 %v1556_v9, %v1551_v8 }
 0x525   :  { %v614_v42 = vmul.f32 1.442695, %v612_v41 }
 0x527   :  { %1252 = vpow2.f32 %v614_v42 }
 0x52d   :  { %v1253_v43 = vpop.eup %1252 }
 0x52e   :  { %v618_v44 = vsel %vm154_vm1, %v1253_v43, 0.0 }
 0x52f   :  { %619 = vadd.xlane.f32.xlu2 %v618_v44 }
 0x535   :  { %v629_v45 = vpop.permute.xlu0 %628 }
 0x53c   :  { %v442_v47 = vpop.xlane.xlu1 %441 }
 0x53d   :  { %v755_v46 = vpop.permute.xlu0 %754  ;;  %1254 = vrcp.f32 %v442_v47 }
 0x53e   :  { %1186 = vmatpush.xpose.msk.msra.mxu3 %vm154_vm1, %v755_v46 }
 0x543   :  { %v1255_v48 = vpop.eup %1254 }
 0x544   :  { %v446_v49 = vmul.f32 %v1255_v48, %v1251_v35 }
 0x545   :  { %v724_v63 = vpop.permute.xlu0 %723 }
 0x547   :  { %693 = vrot.lane.b32.xlu2 %v1556_v9, %s1426_s24 }
 0x554   :  { %v474_v50 = vpop.permute.xlu1 %473 }
 0x555   :  { %494 = vmatpush.msra.mxu2 %v474_v50 }
 0x556   :  { %1171 = vmatmul.msk.f32.vlgmr.msra.gmra.mxu2 %vm154_vm1, %v446_v49 }
 0x557   :  { %649 = vmatpush.msrb.mxu2 %v629_v45 }
 0x55c   :  { %v574_v53 = vpop.permute.xlu1 %573 }
 0x55d   :  { %1177 = vmatpush.xpose.msk.msra.mxu1 %vm154_vm1, %v574_v53  ;;  %v895_v53 = vld [vmem:[%s1780_s5 + $0x10] sm:$0xff] }
 0x560   :  { %1178 = vmatmul.msk.f32.vlgmr.msra.gmra.mxu1 %vm154_vm1, %v572_v54  ;;  %v894_v54 = vld [vmem:[%s1780_s5 + $0x8] sm:$0xff] }
 0x561   :  { %714 = vmatpush.msrb.mxu1 %v1181_v52 }
 0x564   :  { %v513_v55 = vpop.permute.xlu1 %512 }
 0x565   :  { %1174 = vmatmul.msk.f32.gmra.mxu3 %vm154_vm1, %v513_v55 }
 0x56c   :  { %v726_v56 = vpop.permute.xlu1 %725 }
 0x56d   :  { %1184 = vmatpush.xpose.msk.msra.mxu2 %vm154_vm1, %v726_v56 }
 0x574   :  { %v692_v57 = vpop.permute.xlu1 %691 }
 0x575   :  { %1182 = vmatmul.msk.f32.vlgmr.msrb.gmra.mxu1 %vm154_vm1, %v692_v57  ;;  %v893_v57 = vld [vmem:[%s1780_s5] sm:$0xff] }
 0x57c   :  { %v753_v58 = vpop.permute.xlu1 %752 }
 0x57d   :  { %1187 = vmatmul.msk.f32.vlgmr.msra.gmra.mxu3 %vm154_vm1, %v753_v58 }
 0x5a2   :  { %v620_v59 = vpop.xlane.xlu2 %619 }
 0x5a3   :  { %1256 = vrcp.f32 %v620_v59 }
 0x5a9   :  { %v1257_v60 = vpop.eup %1256 }
 0x5aa   :  { %v626_v61 = vmul.f32 %v1257_v60, %v1253_v43  ;;  %v694_v62 = vpop.permute.xlu2 %693 }
 0x5ab   :  { %1183 = vmatmul.msk.f32.gmra.mxu1 %vm154_vm1, %v694_v62 }
 0x5ac   :  { %1179 = vmatmul.msk.f32.vlgmr.msrb.gmra.mxu2 %vm154_vm1, %v626_v61 }
 0x5b4   :  { %1185 = vmatmul.msk.f32.vlgmr.msra.gmra.mxu2 %vm154_vm1, %v724_v63 }
 0x5d9   :  { %v496_v10 = vpop.f32.mrf.mxu2 }
 0x5dd   :  { %v596_v0 = vpop.f32.mrf.mxu1 }
 0x5e8   :  { %v538_v1 = vpop.f32.mrf.mxu3 }
 0x5e9   :  { %v597_v2 = vadd.f32 %v596_v0, %v538_v1 }
 0x5eb   :  { %v605_v3 = vadd.f32 %v1630_v26, %v597_v2 }
 0x5ed   :  { %v609_v4 = vsel %vm154_vm1, %v605_v3, -inf }
 0x5ee   :  { %610 = vmax.xlane.f32.xlu0 %v609_v4 }
 0x5f2   :  { %v716_v7 = vpop.f32.mrf.mxu1 }
 0x600   :  { %v777_v12 = vpop.f32.mrf.mxu3 }
 0x628   :  { %v719_v13 = vpop.f32.mrf.mxu1 }
 0x629   :  { %v778_v14 = vadd.f32 %v777_v12, %v719_v13 }
 0x62b   :  { %v786_v15 = vadd.f32 %v1231_v11, %v778_v14 }
 0x62d   :  { %v790_v16 = vsel %vm154_vm1, %v786_v15, -inf }
 0x62e   :  { %791 = vmax.xlane.f32.xlu2 %v790_v16 }
 0x62f   :  { %v651_v17 = vpop.f32.mrf.mxu2 }
 0x637   :  { %v748_v18 = vpop.f32.mrf.mxu2 }
 0x638   :  { %v749_v20 = vadd.f32 %v748_v18, %v716_v7 }
 0x63a   :  { %v785_v21 = vadd.f32 %v1231_v11, %v749_v20 }
 0x63c   :  { %v787_v22 = vsel %vm154_vm1, %v785_v21, -inf }
 0x63d   :  { %788 = vmax.xlane.f32.xlu1 %v787_v22 }
 0x646   :  { %654 = vrot.lane.b32.xlu2 %v1556_v9, %s1424_s22  ;;  %v896_v9 = vld [vmem:[%s1780_s5 + $0x18] sm:$0xff] }
 0x647   :  { %915 = vmatpush.msrb.mxu3 %v896_v9  ;;  %v1232_v9 = vld [vmem:[%s1781_s6] ss:$0 sm:$0xff] }
 0x649   :  { %916 = vmatpush.msrb.mxu3 %v895_v53 }
 0x64b   :  { %917 = vmatpush.msrb.mxu3 %v894_v54 }
 0x64d   :  { %918 = vmatpush.msrb.mxu3 %v893_v57 }
 0x64e   :  { %871 = vrot.lane.b32.xlu2 %v651_v17, %s1409_s21 }
 0x661   :  { %v611_v23 = vpop.xlane.xlu0 %610 }
 0x662   :  { %v613_v24 = vsub.f32 %v605_v3, %v611_v23 }
 0x664   :  { %v616_v26 = vmul.f32 1.442695, %v613_v24 }
 0x666   :  { %1258 = vpow2.f32 %v616_v26 }
 0x66c   :  { %v1259_v27 = vpop.eup %1258 }
 0x66d   :  { %v621_v28 = vsel %vm154_vm1, %v1259_v27, 0.0 }
 0x66e   :  { %622 = vadd.xlane.f32.xlu0 %v621_v28 }
 0x6a1   :  { %v792_v29 = vpop.xlane.xlu2 %791 }
 0x6a2   :  { %v794_v30 = vsub.f32 %v786_v15, %v792_v29  ;;  %v1428_v15 = vmov 32.0  }
 0x6a4   :  { %v797_v31 = vmul.f32 1.442695, %v794_v30 }
 0x6a6   :  { %1260 = vpow2.f32 %v797_v31  ;;  %v994_v31 = vld [vmem:[#allocation8 + $0x18] sm:$0xff] }
 0x6a9   :  { %v655_v32 = vpop.permute.xlu2 %654 }
 0x6aa   :  { %675 = vmatpush.msrb.mxu0 %v655_v32  ;;  %v993_v32 = vld [vmem:[#allocation8 + $0x10] sm:$0xff] }
 0x6ac   :  { %v1261_v33 = vpop.eup %1260 }
 0x6ad   :  { %v802_v34 = vsel %vm154_vm1, %v1261_v33, 0.0 }
 0x6ae   :  { %803 = vadd.xlane.f32.xlu0 %v802_v34  ;;  %v991_v34 = vld [vmem:[#allocation8] sm:$0xff] }
 0x6b0   :  { %v789_v35 = vpop.xlane.xlu1 %788 }
 0x6b1   :  { %v793_v36 = vsub.f32 %v785_v21, %v789_v35  ;;  %v872_v59 = vpop.permute.xlu2 %871 }
 0x6b3   :  { %v795_v37 = vmul.f32 1.442695, %v793_v36 }
 0x6b5   :  { %1262 = vpow2.f32 %v795_v37 }
 0x6bb   :  { %v1263_v38 = vpop.eup %1262 }
 0x6bc   :  { %v799_v39 = vsel %vm154_vm1, %v1263_v38, 0.0 }
 0x6bd   :  { %800 = vadd.xlane.f32.xlu1 %v799_v39  ;;  %v1036_v39 = vld [vmem:[%s1785_s10 + $0x30] sm:$0xff] }
 0x6c2   :  { %863 = vrot.lane.b32.xlu0 %v1628_v25, %s1413_s2 }
 0x6ca   :  { %865 = vrot.lane.b32.xlu0 %v496_v10, %s1413_s2 }
 0x6d6   :  { %1220 = vrot.lane.b32.xlu1 %v1219_v40, %s1427_s1  ;;  %v1035_v40 = vld [vmem:[%s1785_s10 + $0x28] sm:$0xff] }
 0x6e1   :  { %v623_v41 = vpop.xlane.xlu0 %622 }
 0x6e2   :  { %1264 = vrcp.f32 %v623_v41 }
 0x6e8   :  { %v1265_v42 = vpop.eup %1264 }
 0x6e9   :  { %v627_v43 = vmul.f32 %v1265_v42, %v1259_v27 }
 0x6eb   :  { %1180 = vmatmul.msk.f32.vlgmr.msrb.gmra.mxu0 %vm154_vm1, %v627_v43  ;;  %v1034_v43 = vld [vmem:[%s1785_s10 + $0x20] sm:$0xff] }
 0x721   :  { %v804_v44 = vpop.xlane.xlu0 %803 }
 0x722   :  { %1266 = vrcp.f32 %v804_v44 }
 0x728   :  { %v1267_v46 = vpop.eup %1266 }
 0x729   :  { %v808_v50 = vmul.f32 %v1267_v46, %v1261_v33  ;;  %v992_v33 = vld [vmem:[#allocation8 + $0x8] sm:$0xff]  ;;  %v1033_v46 = vld [vmem:[%s1785_s10 + $0x18] sm:$0xff] }
 0x730   :  { %v801_v45 = vpop.xlane.xlu1 %800 }
 0x731   :  { %1268 = vrcp.f32 %v801_v45 }
 0x732   :  { %1270 = vrcp.f32 %v1428_v15  ;;  %v1235_v15 = vld [vmem:[%s1786_s11] ss:$0 sm:$0xff] }
 0x734   :  { %v864_v58 = vpop.permute.xlu0 %863 }
 0x735   :  { %v885_v60 = vsel %vm154_vm1, %v1599_v51, %v864_v58 }
 0x736   :  { %v888_v62 = vsel %vm887_vm2, %v885_v60, %v872_v59 }
 0x737   :  { %v1269_v47 = vpop.eup %1268 }
 0x738   :  { %v807_v52 = vmul.f32 %v1269_v47, %v1263_v38  ;;  %v1037_v38 = vld [vmem:[%s1785_s10 + $0x38] sm:$0xff] }
 0x739   :  { %1057 = vmatpush.msra.mxu1 %v1037_v38 }
 0x73b   :  { %1058 = vmatpush.msra.mxu1 %v1036_v39 }
 0x73c   :  { %v866_v0 = vpop.permute.xlu0 %865 }
 0x73d   :  { %v886_v2 = vsel %vm154_vm1, %v1625_v19, %v866_v0  ;;  %v1271_v19 = vpop.eup %1270  ;;  %1059 = vmatpush.msra.mxu1 %v1035_v40 }
 0x73e   :  { %v937_v16 = vmul.f32 32.0, %v1271_v19  ;;  %vm941_vm4 = vweird.f32 %v1271_v19 }
 0x73f   :  { %1060 = vmatpush.msra.mxu1 %v1034_v43 }
 0x740   :  { %v938_v17 = vsub.f32 1.0, %v937_v16 }
 0x741   :  { %1061 = vmatpush.msra.mxu1 %v1033_v46 }
 0x742   :  { %v939_v18 = vmul.f32 %v1271_v19, %v938_v17 }
 0x744   :  { %v940_v20 = vadd.f32 %v1271_v19, %v939_v18 }
 0x746   :  { %v1707_v21 = vsel %vm941_vm4, %v1271_v19, %v940_v20 }
 0x748   :  { %v1221_v25 = vpop.permute.xlu1 %1220 }
 0x749   :  { %v1223_v48 = vunpack.i.h.bf16 %v1221_v25  ;;  %v1222_v49 = vunpack.i.l.bf16 %v1221_v25 }
 0x74b   :  { %830 = vmatpush.msra.mxu0 %v1222_v49  ;;  %856 = vmatpush.msrb.mxu2 %v1223_v48 }
 0x74c   :  { %1188 = vmatmul.msk.f32.vlgmr.msra.gmra.mxu0 %vm154_vm1, %v807_v52  ;;  %1189 = vmatmul.msk.f32.vlgmr.msrb.gmra.mxu2 %vm154_vm1, %v808_v50 }
 0x74d   :  { %1017 = vmatpush.msrb.mxu0 %v994_v31 }
 0x74f   :  { %1018 = vmatpush.msrb.mxu0 %v993_v32 }
 0x751   :  { %1019 = vmatpush.msrb.mxu0 %v992_v33 }
 0x753   :  { %1020 = vmatpush.msrb.mxu0 %v991_v34 }
 0x768   :  { %v677_v8 = vpop.f32.mrf.mxu0 }
 0x769   :  { %873 = vrot.lane.b32.xlu2 %v677_v8, %s1409_s21 }
 0x7c3   :  { %v874_v1 = vpop.permute.xlu2 %873 }
 0x7c4   :  { %v889_v3 = vsel %vm887_vm2, %v886_v2, %v874_v1  ;;  %v1032_v2 = vld [vmem:[%s1785_s10 + $0x10] sm:$0xff] }
 0x7c5   :  { %1062 = vmatpush.msra.mxu1 %v1032_v2 }
 0x7c9   :  { %v832_v55 = vpop.f32.mrf.mxu0 }
 0x7ca   :  { %879 = vrot.lane.b32.xlu1 %v832_v55, %s1421_s18 }
 0x7cf   :  { %v858_v56 = vpop.f32.mrf.mxu2 }
 0x7d2   :  { %881 = vrot.lane.b32.xlu1 %v858_v56, %s1421_s18  ;;  %v1233_v56 = vld [vmem:[%s1782_s7] ss:$0 sm:$0xff] }
 0x83c   :  { %v880_v61 = vpop.permute.xlu1 %879 }
 0x83d   :  { %v891_v63 = vsel %vm890_vm3, %v888_v62, %v880_v61 }
 0x83e   :  { %1190 = vmatmul.msk.f32.vlgmr.msrb.gmra.mxu3 %vm117_vm0, %v891_v63 }
 0x844   :  { %v882_v4 = vpop.permute.xlu1 %881 }
 0x845   :  { %v892_v7 = vsel %vm890_vm3, %v889_v3, %v882_v4  ;;  %v1031_v3 = vld [vmem:[%s1785_s10 + $0x8] sm:$0xff]  ;;  %v1030_v4 = vld [vmem:[%s1785_s10] sm:$0xff] }
 0x846   :  { %1191 = vmatmul.msk.f32.gmra.mxu3 %vm117_vm0, %v892_v7  ;;  %1063 = vmatpush.msra.mxu1 %v1031_v3  ;;  %v1234_v7 = vld [vmem:[%s1784_s9] ss:$0 sm:$0xff] }
 0x848   :  { %1064 = vmatpush.msra.mxu1 %v1030_v4 }
 0x8c1   :  { %v920_v10 = vpop.f32.mrf.mxu3 }
 0x8c2   :  { %v926_v51 = vadd.f32 %v920_v10, %v1540_v5 }
 0x8c4   :  { %v930_v11 = vsel %vm117_vm0, %v926_v51, 0.0 }
 0x8c5   :  { %931 = vadd.xlane.f32.xlu0 %v930_v11 }
 0x8c9   :  { %v923_v12 = vpop.f32.mrf.mxu3 }
 0x8ca   :  { %v927_v13 = vadd.f32 %v923_v12, %v1544_v6 }
 0x8cc   :  { %v933_v14 = vsel %vm117_vm0, %v927_v13, 0.0 }
 0x8cd   :  { %934 = vadd.xlane.f32.xlu2 %v933_v14 }
 0x938   :  { %v932_v5 = vpop.xlane.xlu0 %931 }
 0x939   :  { %v943_v22 = vmul.f32 %v1707_v21, %v932_v5 }
 0x93b   :  { %v945_v23 = vsub.f32 %v926_v51, %v943_v22 }
 0x93d   :  { %v947_v24 = vmul.f32 %v945_v23, %v945_v23 }
 0x93f   :  { %v949_v6 = vsel %vm117_vm0, %v947_v24, 0.0 }
 0x940   :  { %950 = vadd.xlane.f32.xlu1 %v949_v6  ;;  %v935_v26 = vpop.xlane.xlu2 %934 }
 0x941   :  { %v944_v27 = vmul.f32 %v1707_v21, %v935_v26 }
 0x943   :  { %v946_v28 = vsub.f32 %v927_v13, %v944_v27 }
 0x945   :  { %v948_v29 = vmul.f32 %v946_v28, %v946_v28 }
 0x947   :  { %v952_v30 = vsel %vm117_vm0, %v948_v29, 0.0 }
 0x948   :  { %953 = vadd.xlane.f32.xlu0 %v952_v30 }
 0x9b3   :  { %v951_v35 = vpop.xlane.xlu1 %950 }
 0x9b4   :  { %v955_v36 = vmul.f32 %v951_v35, %v1707_v21 }
 0x9b6   :  { %v957_v37 = vadd.f32 1e-05, %v955_v36 }
 0x9b8   :  { %1272 = vrsqrt.f32 %v957_v37  ;;  %vm965_vm6 = vweird.f32 %v957_v37 }
 0x9bb   :  { %v954_v41 = vpop.xlane.xlu0 %953 }
 0x9bc   :  { %v956_v42 = vmul.f32 %v954_v41, %v1707_v21 }
 0x9be   :  { %v1273_v44 = vpop.eup %1272  ;;  %v958_v45 = vadd.f32 1e-05, %v956_v42 }
 0x9bf   :  { %v960_v47 = vmul.f32 %v1273_v44, %v957_v37  ;;  %vm966_vm5 = vweird.f32 %v1273_v44 }
 0x9c0   :  { %1274 = vrsqrt.f32 %v958_v45  ;;  %vm967_vm7 = vmor %vm965_vm6, %vm966_vm5  ;;  %vm975_vm9 = vweird.f32 %v958_v45 }
 0x9c1   :  { %v961_v25 = vmul.f32 %v1273_v44, %v960_v47 }
 0x9c3   :  { %v962_v48 = vmul.f32 0.5, %v961_v25  ;;  %v1236_v25 = vld [vmem:[%s1787_s12] ss:$0 sm:$0xff]  ;;  %s1429_s12 = smov [#allocation10]  }
 0x9c4   :  { %s1136_s18 = sshll.u32 %s1429_s12, 4  ;;  %s1137_s18 = int_to_ptr.vmem [resolvable:$true] %s1136_s18 }
 0x9c5   :  { %v963_v49 = vsub.f32 1.5, %v962_v48 }
 0x9c6   :  { %v1275_v50 = vpop.eup %1274 }
 0x9c7   :  { %v964_v52 = vmul.f32 %v1273_v44, %v963_v49  ;;  %v970_v8 = vmul.f32 %v1275_v50, %v958_v45  ;;  %vm976_vm8 = vweird.f32 %v1275_v50 }
 0x9c8   :  { %vm977_vm10 = vmor %vm975_vm9, %vm976_vm8 }
 0x9c9   :  { %v968_v53 = vsel %vm967_vm7, %v1273_v44, %v964_v52  ;;  %v971_v54 = vmul.f32 %v1275_v50, %v970_v8 }
 0x9ca   :  { %v979_v55 = vmul.f32 %v968_v53, %v945_v23 }
 0x9cb   :  { %v972_v57 = vmul.f32 0.5, %v971_v54 }
 0x9cc   :  { %v984_v58 = vmul.f32 %v1232_v9, %v979_v55 }
 0x9cd   :  { %v973_v59 = vsub.f32 1.5, %v972_v57 }
 0x9ce   :  { %v989_v60 = vadd.f32 %v1233_v56, %v984_v58 }
 0x9cf   :  { %v974_v61 = vmul.f32 %v1275_v50, %v973_v59 }
 0x9d0   :  { %1192 = vmatmul.msk.f32.vlgmr.msrb.gmra.mxu0 %vm117_vm0, %v989_v60 }
 0x9d1   :  { %v978_v62 = vsel %vm977_vm10, %v1275_v50, %v974_v61  ;;  %v1237_v50 = vld [vmem:[%s1788_s13] ss:$0 sm:$0xff] }
 0x9d2   :  { %v980_v63 = vmul.f32 %v978_v62, %v946_v28 }
 0x9d4   :  { %v985_v0 = vmul.f32 %v1232_v9, %v980_v63 }
 0x9d6   :  { %v990_v1 = vadd.f32 %v1233_v56, %v985_v0 }
 0x9d8   :  { %1193 = vmatmul.msk.f32.gmra.mxu0 %vm117_vm0, %v990_v1 }
 0xa4d   :  { %v1022_v10 = vpop.f32.mrf.mxu0 }
 0xa4e   :  { %v1023_v51 = vadd.f32 %v1234_v7, %v1022_v10 }
 0xa50   :  { %v1028_v11 = vmax.f32 %v1023_v51, 0.0 }
 0xa52   :  { %1194 = vmatmul.msk.f32.vlgmr.msra.gmra.mxu1 %vm1042_vm11, %v1028_v11 }
 0xa55   :  { %v1025_v12 = vpop.f32.mrf.mxu0 }
 0xa56   :  { %v1026_v13 = vadd.f32 %v1234_v7, %v1025_v12 }
 0xa58   :  { %v1029_v14 = vmax.f32 %v1026_v13, 0.0 }
 0xa5a   :  { %1195 = vmatmul.msk.f32.gmra.mxu1 %vm1042_vm11, %v1029_v14 }
 0xacf   :  { %v1066_v19 = vpop.f32.mrf.mxu1 }
 0xad0   :  { %v1067_v16 = vadd.f32 %v1235_v15, %v1066_v19 }
 0xad2   :  { %v1072_v17 = vadd.f32 %v1067_v16, %v989_v60 }
 0xad4   :  { %v1076_v18 = vsel %vm117_vm0, %v1072_v17, 0.0 }
 0xad5   :  { %1077 = vadd.xlane.f32.xlu2 %v1076_v18 }
 0xad7   :  { %v1069_v20 = vpop.f32.mrf.mxu1 }
 0xad8   :  { %v1070_v5 = vadd.f32 %v1235_v15, %v1069_v20 }
 0xada   :  { %v1073_v22 = vadd.f32 %v1070_v5, %v990_v1 }
 0xadc   :  { %v1079_v23 = vsel %vm117_vm0, %v1073_v22, 0.0 }
 0xadd   :  { %1080 = vadd.xlane.f32.xlu1 %v1079_v23 }
 0xb48   :  { %v1078_v24 = vpop.xlane.xlu2 %1077 }
 0xb49   :  { %v1082_v6 = vmul.f32 %v1078_v24, %v1707_v21 }
 0xb4b   :  { %v1084_v26 = vsub.f32 %v1072_v17, %v1082_v6 }
 0xb4d   :  { %v1086_v27 = vmul.f32 %v1084_v26, %v1084_v26 }
 0xb4f   :  { %v1088_v28 = vsel %vm117_vm0, %v1086_v27, 0.0 }
 0xb50   :  { %v1081_v29 = vpop.xlane.xlu1 %1080  ;;  %1089 = vadd.xlane.f32.xlu0 %v1088_v28 }
 0xb51   :  { %v1083_v30 = vmul.f32 %v1081_v29, %v1707_v21 }
 0xb53   :  { %v1085_v31 = vsub.f32 %v1073_v22, %v1083_v30 }
 0xb55   :  { %v1087_v32 = vmul.f32 %v1085_v31, %v1085_v31 }
 0xb57   :  { %v1091_v33 = vsel %vm117_vm0, %v1087_v32, 0.0 }
 0xb58   :  { %1092 = vadd.xlane.f32.xlu2 %v1091_v33 }
 0xbc3   :  { %v1090_v34 = vpop.xlane.xlu0 %1089 }
 0xbc4   :  { %v1094_v35 = vmul.f32 %v1090_v34, %v1707_v21 }
 0xbc6   :  { %v1096_v36 = vadd.f32 1e-05, %v1094_v35 }
 0xbc8   :  { %1276 = vrsqrt.f32 %v1096_v36  ;;  %vm1104_vm13 = vweird.f32 %v1096_v36 }
 0xbcb   :  { %v1093_v37 = vpop.xlane.xlu2 %1092 }
 0xbcc   :  { %v1095_v38 = vmul.f32 %v1093_v37, %v1707_v21 }
 0xbce   :  { %v1277_v39 = vpop.eup %1276  ;;  %v1097_v40 = vadd.f32 1e-05, %v1095_v38 }
 0xbcf   :  { %v1099_v41 = vmul.f32 %v1277_v39, %v1096_v36  ;;  %vm1105_vm12 = vweird.f32 %v1277_v39 }
 0xbd0   :  { %1278 = vrsqrt.f32 %v1097_v40  ;;  %vm1106_vm14 = vmor %vm1104_vm13, %vm1105_vm12  ;;  %vm1114_vm1 = vweird.f32 %v1097_v40 }
 0xbd1   :  { %v1100_v42 = vmul.f32 %v1277_v39, %v1099_v41 }
 0xbd3   :  { %v1101_v43 = vmul.f32 0.5, %v1100_v42 }
 0xbd5   :  { %v1102_v44 = vsub.f32 1.5, %v1101_v43 }
 0xbd6   :  { %v1279_v45 = vpop.eup %1278 }
 0xbd7   :  { %v1103_v46 = vmul.f32 %v1277_v39, %v1102_v44  ;;  %v1109_v47 = vmul.f32 %v1279_v45, %v1097_v40  ;;  %vm1115_vm15 = vweird.f32 %v1279_v45 }
 0xbd8   :  { %vm1116_vm2 = vmor %vm1114_vm1, %vm1115_vm15 }
 0xbd9   :  { %v1107_v48 = vsel %vm1106_vm14, %v1277_v39, %v1103_v46  ;;  %v1110_v49 = vmul.f32 %v1279_v45, %v1109_v47 }
 0xbda   :  { %v1118_v21 = vmul.f32 %v1107_v48, %v1084_v26 }
 0xbdb   :  { %v1111_v52 = vmul.f32 0.5, %v1110_v49 }
 0xbdc   :  { %v1123_v8 = vmul.f32 %v1236_v25, %v1118_v21 }
 0xbdd   :  { %v1112_v9 = vsub.f32 1.5, %v1111_v52 }
 0xbde   :  { %v1128_v53 = vadd.f32 %v1237_v50, %v1123_v8 }
 0xbdf   :  { %v1113_v54 = vmul.f32 %v1279_v45, %v1112_v9 }
 0xbe0   :  { %1130 = vst.msk [vmem:[#allocation10] sm:$0xff] %vm117_vm0, %v1128_v53 }
 0xbe1   :  { %v1117_v55 = vsel %vm1116_vm2, %v1279_v45, %v1113_v54 }
 0xbe2   :  { %v1119_v56 = vmul.f32 %v1117_v55, %v1085_v31 }
 0xbe4   :  { %v1124_v57 = vmul.f32 %v1236_v25, %v1119_v56 }
 0xbe6   :  { %v1129_v58 = vadd.f32 %v1237_v50, %v1124_v57 }
 0xbe8   :  { %1131 = vst.msk [vmem:[#allocation10 + $0x8] sm:$0xff] %vm117_vm0, %v1129_v58 }
 0xbe9   :  { %1144 = dma.vmem_to_hbm [thread:$0]  %s1137_s18, 256, %s1139_s8, [#allocation4], %s1412_s25, %s1412_s25, %s1413_s2  }
 0xbea   :  { %1406 = dma.done.wait [#allocation4], 256  }
 0xbeb   :  { %1407 = vsyncadd [#allocation4], 4294967040 }
 0xbec   :  { %1149 = vsyncpa [#allocation3], 1 }
 0xbed   :  { %1150 = vsyncpa [#allocation6], 1 }
 0xbee   :  { %1151 = vsyncpa [#allocation9], 1 }
 0xbef   :  { %1152 = vsyncpa [#allocation4], 1 }

</bundles_post_ra>
